<compile_context>
chip_gen: v6e
topology: v6e:2x2x1
jax: 0.10.0
libtpu: 0.0.40
codegen_flags: <defaults>
</compile_context>

<pallas_src>
import math

import numpy as np
import jax
import jax.numpy as jnp
from jax import lax
from jax.experimental import pallas as pl

# ------------------------- configuration (small, consistent with the module) -------------------------
N_FEATURES = 4                 # n_features
N_LAYERS   = 2                 # transformer encoder layers
D_MODEL    = 32                # d_model (divisible by n_features -> d_ob = 8)
N_HEADS    = 4                 # (d_model + d_pe) % n_heads == 0
D_FFN      = 64
MAX_LEN    = 8                 # sequence length
D_PE       = 16
BATCH      = 2

D_OB     = D_MODEL // N_FEATURES        # 8
E_DIM    = D_MODEL + D_PE               # 48  transformer model dim
HEAD_DIM = E_DIM // N_HEADS             # 12
D_PROP   = MAX_LEN * D_OB               # 64  ObservationPropagation channel dim
BL       = BATCH * MAX_LEN              # 16  batch-flattened transformer rows
BF       = BATCH * N_FEATURES           # 8   batch-flattened propagation rows
BHL      = BATCH * N_HEADS * MAX_LEN    # 64  block-diag attention columns (b, h, key)
LN_EPS   = 1e-5
NEG_BIAS = -1e9

# ---------------- packed constant slab (built once with numpy, passed as ONE operand) -----------------
# column layout of CONSTS (BHL=64, 184):
#   [:,    0: 48]  M_head : [col, e]        = 1 if e // HEAD_DIM == head(col)
#   [:,   48: 64]  RrepT  : [col, r]        = 1 if r == batch(col)*L + key(col)
#   [:,   64: 96]  gather : [i, j]          = 1 if i % d_ob == j % d_ob
#   [0:16, 96:160] blk    : [b*L+l, i]      = 1 if i // d_ob == l
#   [0:16,160:168] RepSum : [b*L+l, b'*F+f] = 1 if b' == b          (segment-sum + broadcast)
#   [0:16,168:184] Pperm  : [l*B+b, b*L+l]  = 1                     (l-major output permutation)
C_MHEAD, C_RREP, C_GATH, C_BLK, C_RSUM, C_PERM, C_TOTAL = 0, 48, 64, 96, 160, 168, 184


def _build_consts():
    col = np.arange(BHL)
    col_b = col // (N_HEADS * MAX_LEN)
    col_h = (col // MAX_LEN) % N_HEADS
    col_k = col % MAX_LEN
    r = np.arange(BL)
    row_b, row_l = r // MAX_LEN, r % MAX_LEN
    i = np.arange(D_PROP)
    j = np.arange(D_MODEL)
    e = np.arange(E_DIM)
    f = np.arange(BF)

    consts = np.zeros((BHL, C_TOTAL), np.float32)
    consts[:, C_MHEAD:C_MHEAD + E_DIM] = (e[None, :] // HEAD_DIM == col_h[:, None])
    consts[:, C_RREP:C_RREP + BL] = (r[None, :] == (col_b * MAX_LEN + col_k)[:, None])
    consts[:, C_GATH:C_GATH + D_MODEL] = ((i[:, None] % D_OB) == (j[None, :] % D_OB))
    consts[:BL, C_BLK:C_BLK + D_PROP] = ((i[None, :] // D_OB) == row_l[:, None])
    consts[:BL, C_RSUM:C_RSUM + BF] = ((f[None, :] // N_FEATURES) == row_b[:, None])
    perm = np.zeros((BL, BL), np.float32)
    perm[row_l * BATCH + row_b, r] = 1.0
    consts[:BL, C_PERM:C_PERM + BL] = perm
    return jnp.asarray(consts)


CONSTS = _build_consts()


# ------------------------------------------- fused kernel --------------------------------------------
def raindrop_fused_kernel(h_ref, pe_ref, bias_ref, consts_ref,
                          prop_ref, wqkv_ref, womlp_ref, vecs_ref, o_ref):
    f32 = jnp.float32

    # unpack constants (static slices of the single packed operand)
    m_head  = consts_ref[:, C_MHEAD:C_MHEAD + E_DIM]          # (64, 48)
    rrep_t  = consts_ref[:, C_RREP:C_RREP + BL]               # (64, 16)
    gather  = consts_ref[:, C_GATH:C_GATH + D_MODEL]          # (64, 32)
    blk     = consts_ref[0:BL, C_BLK:C_BLK + D_PROP]          # (16, 64)
    rep_sum = consts_ref[0:BL, C_RSUM:C_RSUM + BF]            # (16, 8)
    perm    = consts_ref[0:BL, C_PERM:C_PERM + BL]            # (16, 16)

    # ---- ObservationPropagation x2 (all-ones graph, unit edge weights, use_beta=False) -------------
    m1 = jnp.maximum(jnp.dot(h_ref[...], prop_ref[0, 0:D_PROP, :], preferred_element_type=f32)
                     + prop_ref[0, D_PROP:D_PROP + 1, :], 0.0)                    # (8, 64)
    # layer-1 node output = per-batch sum over features; replicated to every (b, l) row in one matmul
    sum_rep = jnp.dot(rep_sum, m1, preferred_element_type=f32)                    # (16, 64)
    # layer 2: identical node rows => out = n_features * relu(row @ W2 + b2)
    out2 = float(N_FEATURES) * jnp.maximum(
        jnp.dot(sum_rep, prop_ref[1, 0:D_PROP, :], preferred_element_type=f32)
        + prop_ref[1, D_PROP:D_PROP + 1, :], 0.0)                                 # (16, 64)
    # rearrange (b, l*d_ob) -> (b*L+l, f*d_ob) slab via masked-matmul gather (no reshapes)
    model_part = jnp.dot(out2 * blk, gather, preferred_element_type=f32)          # (16, 32)

    # ---- concat positional encoding, then the transformer encoder (post-norm, eval dropout) --------
    x = jnp.concatenate([model_part, pe_ref[...]], axis=1)                        # (16, 48)
    bias = bias_ref[...]                                                          # (16, 64) additive

    def layer_norm(y, g, b):
        mu = jnp.mean(y, axis=-1, keepdims=True)
        var = jnp.mean((y - mu) ** 2, axis=-1, keepdims=True)
        return (y - mu) * lax.rsqrt(var + LN_EPS) * g + b

    for li in range(N_LAYERS):
        # fused Q|K|V projection (1/sqrt(head_dim) pre-folded into the Q slice)
        qkv = jnp.dot(x, wqkv_ref[li], preferred_element_type=f32) + vecs_ref[li, 0:1, :]
        q = qkv[:, 0:E_DIM]                                                       # (16, 48)
        # build block-diagonal K~ / V~ (rows = (batch, head, key)) with one replication matmul
        kv_rep = jnp.dot(rrep_t, qkv[:, E_DIM:3 * E_DIM], preferred_element_type=f32)  # (64, 96)
        kt = kv_rep[:, 0:E_DIM] * m_head                                          # (64, 48)
        vt = kv_rep[:, E_DIM:2 * E_DIM] * m_head                                  # (64, 48)
        # all-heads all-batches scores in one matmul; bias masks cross-batch + padded keys
        s = lax.dot_general(q, kt, (((1,), (1,)), ((), ())),
                            preferred_element_type=f32) + bias                    # (16, 64)
        p = jnp.exp(s - jnp.max(s, axis=-1, keepdims=True))
        den = jnp.dot(p, m_head, preferred_element_type=f32)      # per-head denom, head lanes (16,48)
        ctx = jnp.dot(p, vt, preferred_element_type=f32) * pl.reciprocal(den, approx=True)
        attn = (jnp.dot(ctx, womlp_ref[li, 0:E_DIM, 0:E_DIM], preferred_element_type=f32)
                + vecs_ref[li, 1:2, 0:E_DIM])
        x = layer_norm(x + attn, vecs_ref[li, 4:5, 0:E_DIM], vecs_ref[li, 5:6, 0:E_DIM])
        hid = jnp.maximum(
            jnp.dot(x, womlp_ref[li, 0:E_DIM, E_DIM:E_DIM + D_FFN], preferred_element_type=f32)
            + vecs_ref[li, 2:3, 0:D_FFN], 0.0)
        ff = (jnp.dot(hid, womlp_ref[li, E_DIM:E_DIM + D_FFN, 0:E_DIM], preferred_element_type=f32)
              + vecs_ref[li, 3:4, 0:E_DIM])
        x = layer_norm(x + ff, vecs_ref[li, 6:7, 0:E_DIM], vecs_ref[li, 7:8, 0:E_DIM])

    # permute rows b*L+l -> l*B+b so the wrapper only needs a free reshape to (L, B, E)
    o_ref[...] = jnp.dot(perm, x, preferred_element_type=f32)


def run_backbone(h, pe, bias64, params):
    return pl.pallas_call(
        raindrop_fused_kernel,
        out_shape=jax.ShapeDtypeStruct((BL, E_DIM), jnp.float32),
    )(h, pe, bias64, CONSTS, params["prop"], params["wqkv"], params["womlp"], params["vecs"])


# --------------------------------------------- parameters --------------------------------------------
def init_params(key):
    ks = jax.random.split(key, 4)

    def w(k, shape, scale=0.05):
        return jax.random.normal(k, shape, jnp.float32) * scale

    params = {}
    bound = (6.0 / (N_FEATURES * D_OB + 1)) ** 0.5               # xavier-uniform bound for R_u
    params["R_u"] = jax.random.uniform(ks[0], (1, N_FEATURES * D_OB), jnp.float32, -bound, bound)

    # ObservationPropagation lin_value weights (pre-transposed (in, out)) + bias row, packed (2,65,64)
    prop = jnp.zeros((2, D_PROP + 1, D_PROP), jnp.float32)
    prop = prop.at[0, :D_PROP, :].set(w(ks[1], (D_PROP, D_PROP)))
    prop = prop.at[0, D_PROP, :].set(0.01)
    prop = prop.at[1, :D_PROP, :].set(w(ks[2], (D_PROP, D_PROP)))
    prop = prop.at[1, D_PROP, :].set(0.01)
    params["prop"] = prop

    scale = 1.0 / math.sqrt(HEAD_DIM)
    wqkv_l, womlp_l, vecs_l = [], [], []
    for lk in jax.random.split(ks[3], N_LAYERS):
        sk = jax.random.split(lk, 6)
        wq, wk, wv = w(sk[0], (E_DIM, E_DIM)), w(sk[1], (E_DIM, E_DIM)), w(sk[2], (E_DIM, E_DIM))
        wo, w1, w2 = w(sk[3], (E_DIM, E_DIM)), w(sk[4], (E_DIM, D_FFN)), w(sk[5], (D_FFN, E_DIM))
        bq = jnp.zeros((E_DIM,), jnp.float32)
        bk = jnp.zeros((E_DIM,), jnp.float32)
        bv = jnp.zeros((E_DIM,), jnp.float32)
        # fused Q|K|V weight; attention score scale folded into the Q slice (weight AND bias)
        wqkv_l.append(jnp.concatenate([wq * scale, wk, wv], axis=1))              # (48, 144)
        slab = jnp.zeros((E_DIM + D_FFN, E_DIM + D_FFN), jnp.float32)             # (112, 112)
        slab = slab.at[:E_DIM, :E_DIM].set(wo)
        slab = slab.at[:E_DIM, E_DIM:].set(w1)
        slab = slab.at[E_DIM:, :E_DIM].set(w2)
        womlp_l.append(slab)
        vrow = jnp.zeros((8, 3 * E_DIM), jnp.float32)                             # (8, 144)
        vrow = vrow.at[0, :].set(jnp.concatenate([bq * scale, bk, bv]))           # bqkv
        vrow = vrow.at[1, :E_DIM].set(jnp.zeros((E_DIM,), jnp.float32))           # bo
        vrow = vrow.at[2, :D_FFN].set(jnp.zeros((D_FFN,), jnp.float32))           # b1
        vrow = vrow.at[3, :E_DIM].set(jnp.zeros((E_DIM,), jnp.float32))           # b2
        vrow = vrow.at[4, :E_DIM].set(jnp.ones((E_DIM,), jnp.float32))            # ln1 gamma
        vrow = vrow.at[5, :E_DIM].set(jnp.zeros((E_DIM,), jnp.float32))           # ln1 beta
        vrow = vrow.at[6, :E_DIM].set(jnp.ones((E_DIM,), jnp.float32))            # ln2 gamma
        vrow = vrow.at[7, :E_DIM].set(jnp.zeros((E_DIM,), jnp.float32))           # ln2 beta
        vecs_l.append(vrow)
    params["wqkv"] = jnp.stack(wqkv_l)
    params["womlp"] = jnp.stack(womlp_l)
    params["vecs"] = jnp.stack(vecs_l)
    return params


# ----------------------------------------------- forward ---------------------------------------------
def backbone_raindrop_forward(X, timestamps, lengths, params):
    B, L, F_ = X.shape
    # tiny elementwise prep (fuses into one XLA fusion); all matmul-heavy / serial work is in
    # the single fused Pallas kernel.
    x_t = jnp.swapaxes(X.astype(jnp.float32), 1, 2).reshape(B * F_, L)             # (B*F, L)
    x_rep = jnp.repeat(x_t, D_OB, axis=-1)                                         # repeat_interleave
    r_u = params["R_u"].reshape(F_, 1, D_OB)
    ru_rep = jnp.tile(jnp.broadcast_to(r_u, (F_, L, D_OB)).reshape(F_, D_PROP), (B, 1))
    h = jnp.maximum(x_rep * ru_rep, 0.0)                                           # (B*F, L*d_ob)

    # positional encoding rows (b-major row order matching the kernel slab)
    timescales = MAX_LEN ** jnp.linspace(0.0, 1.0, D_PE // 2)
    scaled = timestamps.astype(jnp.float32)[..., None] / timescales[None, None, :]
    pe = jnp.concatenate([jnp.sin(scaled), jnp.cos(scaled)], axis=-1).reshape(B * L, D_PE)

    # key-padding mask (returned) + combined block-diag attention bias (cross-batch & padded keys)
    mask = jnp.arange(L)[None, :] >= lengths                                       # (B, L), True == pad
    lengths_flat = lengths.reshape(B)
    col = jnp.arange(B * N_HEADS * L)
    col_b = col // (N_HEADS * L)
    col_k = col % L
    row_b = jnp.arange(B * L) // L
    valid = (col_b[None, :] == row_b[:, None]) & (col_k[None, :] < lengths_flat[col_b][None, :])
    bias64 = jnp.where(valid, 0.0, NEG_BIAS).astype(jnp.float32)                   # (B*L, B*H*L)

    out2d = run_backbone(h, pe, bias64, params)                                    # (B*L, E), l-major
    out = out2d.reshape(L, B, D_MODEL + D_PE)                                      # free reshape
    return out, mask


# ------------------------------------------------ main -----------------------------------------------
if __name__ == "__main__":
    key = jax.random.PRNGKey(0)
    k_x, k_t, k_p = jax.random.split(key, 3)

    X = jax.random.normal(k_x, (BATCH, MAX_LEN, N_FEATURES), jnp.float32)
    timestamps = jnp.cumsum(
        jax.random.uniform(k_t, (BATCH, MAX_LEN), jnp.float32, 0.1, 1.0), axis=1)
    lengths = jnp.array([[MAX_LEN], [MAX_LEN - 3]], dtype=jnp.int32)               # every length >= 1

    params = init_params(k_p)
    fwd = jax.jit(backbone_raindrop_forward)
    out, mask = fwd(X, timestamps, lengths, params)
    out = jax.block_until_ready(out)
    mask = jax.block_until_ready(mask)

    assert out.shape == (MAX_LEN, BATCH, D_MODEL + D_PE)
    assert mask.shape == (BATCH, MAX_LEN)
    assert bool(jnp.all(jnp.isfinite(out)))
    print("KERNEL_OK")
</pallas_src>

<mosaic_0001>
module attributes {stable_mosaic.version = 11 : i64} {
  func.func @raindrop_fused_kernel(%arg0: memref<8x64xf32, #tpu.memory_space<vmem>>, %arg1: memref<16x16xf32, #tpu.memory_space<vmem>>, %arg2: memref<16x64xf32, #tpu.memory_space<vmem>>, %arg3: memref<64x184xf32, #tpu.memory_space<vmem>>, %arg4: memref<2x65x64xf32, #tpu.memory_space<vmem>>, %arg5: memref<2x48x144xf32, #tpu.memory_space<vmem>>, %arg6: memref<2x112x112xf32, #tpu.memory_space<vmem>>, %arg7: memref<2x8x144xf32, #tpu.memory_space<vmem>>, %arg8: memref<16x48xf32, #tpu.memory_space<vmem>>) attributes {dimension_semantics = [], scalar_prefetch = 0 : i64, scratch_operands = 0 : i64, tpu.core_type = #tpu.core_type<tc>} {
    %c0 = arith.constant 0 : index
    %c0_0 = arith.constant 0 : index
    %0 = vector.load %arg3[%c0, %c0_0] : memref<64x184xf32, #tpu.memory_space<vmem>>, vector<64x48xf32>
    %c0_1 = arith.constant 0 : index
    %c48 = arith.constant 48 : index
    %1 = vector.load %arg3[%c0_1, %c48] : memref<64x184xf32, #tpu.memory_space<vmem>>, vector<64x16xf32>
    %c0_2 = arith.constant 0 : index
    %c64 = arith.constant 64 : index
    %2 = vector.load %arg3[%c0_2, %c64] : memref<64x184xf32, #tpu.memory_space<vmem>>, vector<64x32xf32>
    %c0_3 = arith.constant 0 : index
    %c96 = arith.constant 96 : index
    %3 = vector.load %arg3[%c0_3, %c96] : memref<64x184xf32, #tpu.memory_space<vmem>>, vector<16x64xf32>
    %c0_4 = arith.constant 0 : index
    %c160 = arith.constant 160 : index
    %4 = vector.load %arg3[%c0_4, %c160] : memref<64x184xf32, #tpu.memory_space<vmem>>, vector<16x8xf32>
    %c0_5 = arith.constant 0 : index
    %c168 = arith.constant 168 : index
    %5 = vector.load %arg3[%c0_5, %c168] : memref<64x184xf32, #tpu.memory_space<vmem>>, vector<16x16xf32>
    %c0_6 = arith.constant 0 : index
    %c0_7 = arith.constant 0 : index
    %6 = vector.load %arg0[%c0_6, %c0_7] : memref<8x64xf32, #tpu.memory_space<vmem>>, vector<8x64xf32>
    %c0_8 = arith.constant 0 : index
    %c0_9 = arith.constant 0 : index
    %c0_10 = arith.constant 0 : index
    %7 = vector.load %arg4[%c0_8, %c0_9, %c0_10] : memref<2x65x64xf32, #tpu.memory_space<vmem>>, vector<1x64x64xf32>
    %8 = vector.shape_cast %7 : vector<1x64x64xf32> to vector<64x64xf32>
    %cst = arith.constant dense<0.000000e+00> : vector<8x64xf32>
    %9 = tpu.matmul %6, %8, %cst {dimension_numbers = #tpu.dot_dimension_numbers<[1], [0], [0], [1], [0, 0, 1, 1], [], []>} : vector<8x64xf32>, vector<64x64xf32>, vector<8x64xf32> -> vector<8x64xf32>
    %c0_11 = arith.constant 0 : index
    %c64_12 = arith.constant 64 : index
    %c0_13 = arith.constant 0 : index
    %10 = vector.load %arg4[%c0_11, %c64_12, %c0_13] : memref<2x65x64xf32, #tpu.memory_space<vmem>>, vector<1x1x64xf32>
    %11 = vector.shape_cast %10 : vector<1x1x64xf32> to vector<1x64xf32>
    %12 = vector.broadcast %11 : vector<1x64xf32> to vector<8x64xf32>
    %13 = arith.addf %9, %12 : vector<8x64xf32>
    %cst_14 = arith.constant 0.000000e+00 : f32
    %14 = vector.broadcast %cst_14 : f32 to vector<8x64xf32>
    %15 = arith.maximumf %13, %14 : vector<8x64xf32>
    %cst_15 = arith.constant dense<0.000000e+00> : vector<16x64xf32>
    %16 = tpu.matmul %4, %15, %cst_15 {dimension_numbers = #tpu.dot_dimension_numbers<[1], [0], [0], [1], [0, 0, 1, 1], [], []>} : vector<16x8xf32>, vector<8x64xf32>, vector<16x64xf32> -> vector<16x64xf32>
    %c1 = arith.constant 1 : index
    %c0_16 = arith.constant 0 : index
    %c0_17 = arith.constant 0 : index
    %17 = vector.load %arg4[%c1, %c0_16, %c0_17] : memref<2x65x64xf32, #tpu.memory_space<vmem>>, vector<1x64x64xf32>
    %18 = vector.shape_cast %17 : vector<1x64x64xf32> to vector<64x64xf32>
    %cst_18 = arith.constant dense<0.000000e+00> : vector<16x64xf32>
    %19 = tpu.matmul %16, %18, %cst_18 {dimension_numbers = #tpu.dot_dimension_numbers<[1], [0], [0], [1], [0, 0, 1, 1], [], []>} : vector<16x64xf32>, vector<64x64xf32>, vector<16x64xf32> -> vector<16x64xf32>
    %c1_19 = arith.constant 1 : index
    %c64_20 = arith.constant 64 : index
    %c0_21 = arith.constant 0 : index
    %20 = vector.load %arg4[%c1_19, %c64_20, %c0_21] : memref<2x65x64xf32, #tpu.memory_space<vmem>>, vector<1x1x64xf32>
    %21 = vector.shape_cast %20 : vector<1x1x64xf32> to vector<1x64xf32>
    %22 = vector.broadcast %21 : vector<1x64xf32> to vector<16x64xf32>
    %23 = arith.addf %19, %22 : vector<16x64xf32>
    %cst_22 = arith.constant 0.000000e+00 : f32
    %24 = vector.broadcast %cst_22 : f32 to vector<16x64xf32>
    %25 = arith.maximumf %23, %24 : vector<16x64xf32>
    %cst_23 = arith.constant 4.000000e+00 : f32
    %26 = vector.broadcast %cst_23 : f32 to vector<16x64xf32>
    %27 = arith.mulf %26, %25 : vector<16x64xf32>
    %28 = arith.mulf %27, %3 : vector<16x64xf32>
    %cst_24 = arith.constant dense<0.000000e+00> : vector<16x32xf32>
    %29 = tpu.matmul %28, %2, %cst_24 {dimension_numbers = #tpu.dot_dimension_numbers<[1], [0], [0], [1], [0, 0, 1, 1], [], []>} : vector<16x64xf32>, vector<64x32xf32>, vector<16x32xf32> -> vector<16x32xf32>
    %c0_25 = arith.constant 0 : index
    %c0_26 = arith.constant 0 : index
    %30 = vector.load %arg1[%c0_25, %c0_26] : memref<16x16xf32, #tpu.memory_space<vmem>>, vector<16x16xf32>
    %31 = tpu.concatenate %29, %30 in 1 : vector<16x32xf32>, vector<16x16xf32> -> vector<16x48xf32>
    %c0_27 = arith.constant 0 : index
    %c0_28 = arith.constant 0 : index
    %32 = vector.load %arg2[%c0_27, %c0_28] : memref<16x64xf32, #tpu.memory_space<vmem>>, vector<16x64xf32>
    %c0_29 = arith.constant 0 : index
    %c0_30 = arith.constant 0 : index
    %c0_31 = arith.constant 0 : index
    %33 = vector.load %arg5[%c0_29, %c0_30, %c0_31] : memref<2x48x144xf32, #tpu.memory_space<vmem>>, vector<1x48x144xf32>
    %34 = vector.shape_cast %33 : vector<1x48x144xf32> to vector<48x144xf32>
    %cst_32 = arith.constant dense<0.000000e+00> : vector<16x144xf32>
    %35 = tpu.matmul %31, %34, %cst_32 {dimension_numbers = #tpu.dot_dimension_numbers<[1], [0], [0], [1], [0, 0, 1, 1], [], []>} : vector<16x48xf32>, vector<48x144xf32>, vector<16x144xf32> -> vector<16x144xf32>
    %c0_33 = arith.constant 0 : index
    %c0_34 = arith.constant 0 : index
    %c0_35 = arith.constant 0 : index
    %36 = vector.load %arg7[%c0_33, %c0_34, %c0_35] : memref<2x8x144xf32, #tpu.memory_space<vmem>>, vector<1x1x144xf32>
    %37 = vector.shape_cast %36 : vector<1x1x144xf32> to vector<1x144xf32>
    %38 = vector.broadcast %37 : vector<1x144xf32> to vector<16x144xf32>
    %39 = arith.addf %35, %38 : vector<16x144xf32>
    %40 = vector.extract_strided_slice %39 {offsets = [0, 0], sizes = [16, 48], strides = [1, 1]} : vector<16x144xf32> to vector<16x48xf32>
    %41 = vector.extract_strided_slice %39 {offsets = [0, 48], sizes = [16, 96], strides = [1, 1]} : vector<16x144xf32> to vector<16x96xf32>
    %cst_36 = arith.constant dense<0.000000e+00> : vector<64x96xf32>
    %42 = tpu.matmul %1, %41, %cst_36 {dimension_numbers = #tpu.dot_dimension_numbers<[1], [0], [0], [1], [0, 0, 1, 1], [], []>} : vector<64x16xf32>, vector<16x96xf32>, vector<64x96xf32> -> vector<64x96xf32>
    %43 = vector.extract_strided_slice %42 {offsets = [0, 0], sizes = [64, 48], strides = [1, 1]} : vector<64x96xf32> to vector<64x48xf32>
    %44 = arith.mulf %43, %0 : vector<64x48xf32>
    %45 = vector.extract_strided_slice %42 {offsets = [0, 48], sizes = [64, 48], strides = [1, 1]} : vector<64x96xf32> to vector<64x48xf32>
    %46 = arith.mulf %45, %0 : vector<64x48xf32>
    %cst_37 = arith.constant dense<0.000000e+00> : vector<16x64xf32>
    %47 = tpu.matmul %40, %44, %cst_37 {dimension_numbers = #tpu.dot_dimension_numbers<[1], [1], [0], [0], [0, 0, 1, 0], [], []>} : vector<16x48xf32>, vector<64x48xf32>, vector<16x64xf32> -> vector<16x64xf32>
    %48 = arith.addf %47, %32 : vector<16x64xf32>
    %cst_38 = arith.constant dense<0xFF800000> : vector<16xf32>
    %49 = vector.multi_reduction <maximumf>, %48, %cst_38 [1] : vector<16x64xf32> to vector<16xf32>
    %50 = vector.shape_cast %49 : vector<16xf32> to vector<16x1xf32>
    %51 = vector.broadcast %50 : vector<16x1xf32> to vector<16x64xf32>
    %52 = arith.subf %48, %51 : vector<16x64xf32>
    %53 = math.exp %52 : vector<16x64xf32>
    %cst_39 = arith.constant dense<0.000000e+00> : vector<16x48xf32>
    %54 = tpu.matmul %53, %0, %cst_39 {dimension_numbers = #tpu.dot_dimension_numbers<[1], [0], [0], [1], [0, 0, 1, 1], [], []>} : vector<16x64xf32>, vector<64x48xf32>, vector<16x48xf32> -> vector<16x48xf32>
    %cst_40 = arith.constant dense<0.000000e+00> : vector<16x48xf32>
    %55 = tpu.matmul %53, %46, %cst_40 {dimension_numbers = #tpu.dot_dimension_numbers<[1], [0], [0], [1], [0, 0, 1, 1], [], []>} : vector<16x64xf32>, vector<64x48xf32>, vector<16x48xf32> -> vector<16x48xf32>
    %56 = tpu.reciprocal %54 {approx = true} : vector<16x48xf32> -> vector<16x48xf32>
    %57 = arith.mulf %55, %56 : vector<16x48xf32>
    %c0_41 = arith.constant 0 : index
    %c0_42 = arith.constant 0 : index
    %c0_43 = arith.constant 0 : index
    %58 = vector.load %arg6[%c0_41, %c0_42, %c0_43] : memref<2x112x112xf32, #tpu.memory_space<vmem>>, vector<1x48x48xf32>
    %59 = vector.shape_cast %58 : vector<1x48x48xf32> to vector<48x48xf32>
    %cst_44 = arith.constant dense<0.000000e+00> : vector<16x48xf32>
    %60 = tpu.matmul %57, %59, %cst_44 {dimension_numbers = #tpu.dot_dimension_numbers<[1], [0], [0], [1], [0, 0, 1, 1], [], []>} : vector<16x48xf32>, vector<48x48xf32>, vector<16x48xf32> -> vector<16x48xf32>
    %c0_45 = arith.constant 0 : index
    %c1_46 = arith.constant 1 : index
    %c0_47 = arith.constant 0 : index
    %61 = vector.load %arg7[%c0_45, %c1_46, %c0_47] : memref<2x8x144xf32, #tpu.memory_space<vmem>>, vector<1x1x48xf32>
    %62 = vector.shape_cast %61 : vector<1x1x48xf32> to vector<1x48xf32>
    %63 = vector.broadcast %62 : vector<1x48xf32> to vector<16x48xf32>
    %64 = arith.addf %60, %63 : vector<16x48xf32>
    %65 = arith.addf %31, %64 : vector<16x48xf32>
    %c0_48 = arith.constant 0 : index
    %c4 = arith.constant 4 : index
    %c0_49 = arith.constant 0 : index
    %66 = vector.load %arg7[%c0_48, %c4, %c0_49] : memref<2x8x144xf32, #tpu.memory_space<vmem>>, vector<1x1x48xf32>
    %67 = vector.shape_cast %66 : vector<1x1x48xf32> to vector<1x48xf32>
    %c0_50 = arith.constant 0 : index
    %c5 = arith.constant 5 : index
    %c0_51 = arith.constant 0 : index
    %68 = vector.load %arg7[%c0_50, %c5, %c0_51] : memref<2x8x144xf32, #tpu.memory_space<vmem>>, vector<1x1x48xf32>
    %69 = vector.shape_cast %68 : vector<1x1x48xf32> to vector<1x48xf32>
    %cst_52 = arith.constant dense<0.000000e+00> : vector<16xf32>
    %70 = vector.multi_reduction <add>, %65, %cst_52 [1] : vector<16x48xf32> to vector<16xf32>
    %71 = vector.shape_cast %70 : vector<16xf32> to vector<16x1xf32>
    %cst_53 = arith.constant 4.800000e+01 : f32
    %72 = vector.broadcast %cst_53 : f32 to vector<16x1xf32>
    %73 = arith.divf %71, %72 : vector<16x1xf32>
    %74 = vector.broadcast %73 : vector<16x1xf32> to vector<16x48xf32>
    %75 = arith.subf %65, %74 : vector<16x48xf32>
    %76 = arith.mulf %75, %75 : vector<16x48xf32>
    %cst_54 = arith.constant dense<0.000000e+00> : vector<16xf32>
    %77 = vector.multi_reduction <add>, %76, %cst_54 [1] : vector<16x48xf32> to vector<16xf32>
    %78 = vector.shape_cast %77 : vector<16xf32> to vector<16x1xf32>
    %cst_55 = arith.constant 4.800000e+01 : f32
    %79 = vector.broadcast %cst_55 : f32 to vector<16x1xf32>
    %80 = arith.divf %78, %79 : vector<16x1xf32>
    %81 = vector.broadcast %73 : vector<16x1xf32> to vector<16x48xf32>
    %82 = arith.subf %65, %81 : vector<16x48xf32>
    %cst_56 = arith.constant 9.99999974E-6 : f32
    %83 = vector.broadcast %cst_56 : f32 to vector<16x1xf32>
    %84 = arith.addf %80, %83 : vector<16x1xf32>
    %85 = math.rsqrt %84 : vector<16x1xf32>
    %86 = vector.broadcast %85 : vector<16x1xf32> to vector<16x48xf32>
    %87 = arith.mulf %82, %86 : vector<16x48xf32>
    %88 = vector.broadcast %67 : vector<1x48xf32> to vector<16x48xf32>
    %89 = arith.mulf %87, %88 : vector<16x48xf32>
    %90 = vector.broadcast %69 : vector<1x48xf32> to vector<16x48xf32>
    %91 = arith.addf %89, %90 : vector<16x48xf32>
    %c0_57 = arith.constant 0 : index
    %c0_58 = arith.constant 0 : index
    %c48_59 = arith.constant 48 : index
    %92 = vector.load %arg6[%c0_57, %c0_58, %c48_59] : memref<2x112x112xf32, #tpu.memory_space<vmem>>, vector<1x48x64xf32>
    %93 = vector.shape_cast %92 : vector<1x48x64xf32> to vector<48x64xf32>
    %cst_60 = arith.constant dense<0.000000e+00> : vector<16x64xf32>
    %94 = tpu.matmul %91, %93, %cst_60 {dimension_numbers = #tpu.dot_dimension_numbers<[1], [0], [0], [1], [0, 0, 1, 1], [], []>} : vector<16x48xf32>, vector<48x64xf32>, vector<16x64xf32> -> vector<16x64xf32>
    %c0_61 = arith.constant 0 : index
    %c2 = arith.constant 2 : index
    %c0_62 = arith.constant 0 : index
    %95 = vector.load %arg7[%c0_61, %c2, %c0_62] : memref<2x8x144xf32, #tpu.memory_space<vmem>>, vector<1x1x64xf32>
    %96 = vector.shape_cast %95 : vector<1x1x64xf32> to vector<1x64xf32>
    %97 = vector.broadcast %96 : vector<1x64xf32> to vector<16x64xf32>
    %98 = arith.addf %94, %97 : vector<16x64xf32>
    %cst_63 = arith.constant 0.000000e+00 : f32
    %99 = vector.broadcast %cst_63 : f32 to vector<16x64xf32>
    %100 = arith.maximumf %98, %99 : vector<16x64xf32>
    %c0_64 = arith.constant 0 : index
    %c48_65 = arith.constant 48 : index
    %c0_66 = arith.constant 0 : index
    %101 = vector.load %arg6[%c0_64, %c48_65, %c0_66] : memref<2x112x112xf32, #tpu.memory_space<vmem>>, vector<1x64x48xf32>
    %102 = vector.shape_cast %101 : vector<1x64x48xf32> to vector<64x48xf32>
    %cst_67 = arith.constant dense<0.000000e+00> : vector<16x48xf32>
    %103 = tpu.matmul %100, %102, %cst_67 {dimension_numbers = #tpu.dot_dimension_numbers<[1], [0], [0], [1], [0, 0, 1, 1], [], []>} : vector<16x64xf32>, vector<64x48xf32>, vector<16x48xf32> -> vector<16x48xf32>
    %c0_68 = arith.constant 0 : index
    %c3 = arith.constant 3 : index
    %c0_69 = arith.constant 0 : index
    %104 = vector.load %arg7[%c0_68, %c3, %c0_69] : memref<2x8x144xf32, #tpu.memory_space<vmem>>, vector<1x1x48xf32>
    %105 = vector.shape_cast %104 : vector<1x1x48xf32> to vector<1x48xf32>
    %106 = vector.broadcast %105 : vector<1x48xf32> to vector<16x48xf32>
    %107 = arith.addf %103, %106 : vector<16x48xf32>
    %108 = arith.addf %91, %107 : vector<16x48xf32>
    %c0_70 = arith.constant 0 : index
    %c6 = arith.constant 6 : index
    %c0_71 = arith.constant 0 : index
    %109 = vector.load %arg7[%c0_70, %c6, %c0_71] : memref<2x8x144xf32, #tpu.memory_space<vmem>>, vector<1x1x48xf32>
    %110 = vector.shape_cast %109 : vector<1x1x48xf32> to vector<1x48xf32>
    %c0_72 = arith.constant 0 : index
    %c7 = arith.constant 7 : index
    %c0_73 = arith.constant 0 : index
    %111 = vector.load %arg7[%c0_72, %c7, %c0_73] : memref<2x8x144xf32, #tpu.memory_space<vmem>>, vector<1x1x48xf32>
    %112 = vector.shape_cast %111 : vector<1x1x48xf32> to vector<1x48xf32>
    %cst_74 = arith.constant dense<0.000000e+00> : vector<16xf32>
    %113 = vector.multi_reduction <add>, %108, %cst_74 [1] : vector<16x48xf32> to vector<16xf32>
    %114 = vector.shape_cast %113 : vector<16xf32> to vector<16x1xf32>
    %cst_75 = arith.constant 4.800000e+01 : f32
    %115 = vector.broadcast %cst_75 : f32 to vector<16x1xf32>
    %116 = arith.divf %114, %115 : vector<16x1xf32>
    %117 = vector.broadcast %116 : vector<16x1xf32> to vector<16x48xf32>
    %118 = arith.subf %108, %117 : vector<16x48xf32>
    %119 = arith.mulf %118, %118 : vector<16x48xf32>
    %cst_76 = arith.constant dense<0.000000e+00> : vector<16xf32>
    %120 = vector.multi_reduction <add>, %119, %cst_76 [1] : vector<16x48xf32> to vector<16xf32>
    %121 = vector.shape_cast %120 : vector<16xf32> to vector<16x1xf32>
    %cst_77 = arith.constant 4.800000e+01 : f32
    %122 = vector.broadcast %cst_77 : f32 to vector<16x1xf32>
    %123 = arith.divf %121, %122 : vector<16x1xf32>
    %124 = vector.broadcast %116 : vector<16x1xf32> to vector<16x48xf32>
    %125 = arith.subf %108, %124 : vector<16x48xf32>
    %cst_78 = arith.constant 9.99999974E-6 : f32
    %126 = vector.broadcast %cst_78 : f32 to vector<16x1xf32>
    %127 = arith.addf %123, %126 : vector<16x1xf32>
    %128 = math.rsqrt %127 : vector<16x1xf32>
    %129 = vector.broadcast %128 : vector<16x1xf32> to vector<16x48xf32>
    %130 = arith.mulf %125, %129 : vector<16x48xf32>
    %131 = vector.broadcast %110 : vector<1x48xf32> to vector<16x48xf32>
    %132 = arith.mulf %130, %131 : vector<16x48xf32>
    %133 = vector.broadcast %112 : vector<1x48xf32> to vector<16x48xf32>
    %134 = arith.addf %132, %133 : vector<16x48xf32>
    %c1_79 = arith.constant 1 : index
    %c0_80 = arith.constant 0 : index
    %c0_81 = arith.constant 0 : index
    %135 = vector.load %arg5[%c1_79, %c0_80, %c0_81] : memref<2x48x144xf32, #tpu.memory_space<vmem>>, vector<1x48x144xf32>
    %136 = vector.shape_cast %135 : vector<1x48x144xf32> to vector<48x144xf32>
    %cst_82 = arith.constant dense<0.000000e+00> : vector<16x144xf32>
    %137 = tpu.matmul %134, %136, %cst_82 {dimension_numbers = #tpu.dot_dimension_numbers<[1], [0], [0], [1], [0, 0, 1, 1], [], []>} : vector<16x48xf32>, vector<48x144xf32>, vector<16x144xf32> -> vector<16x144xf32>
    %c1_83 = arith.constant 1 : index
    %c0_84 = arith.constant 0 : index
    %c0_85 = arith.constant 0 : index
    %138 = vector.load %arg7[%c1_83, %c0_84, %c0_85] : memref<2x8x144xf32, #tpu.memory_space<vmem>>, vector<1x1x144xf32>
    %139 = vector.shape_cast %138 : vector<1x1x144xf32> to vector<1x144xf32>
    %140 = vector.broadcast %139 : vector<1x144xf32> to vector<16x144xf32>
    %141 = arith.addf %137, %140 : vector<16x144xf32>
    %142 = vector.extract_strided_slice %141 {offsets = [0, 0], sizes = [16, 48], strides = [1, 1]} : vector<16x144xf32> to vector<16x48xf32>
    %143 = vector.extract_strided_slice %141 {offsets = [0, 48], sizes = [16, 96], strides = [1, 1]} : vector<16x144xf32> to vector<16x96xf32>
    %cst_86 = arith.constant dense<0.000000e+00> : vector<64x96xf32>
    %144 = tpu.matmul %1, %143, %cst_86 {dimension_numbers = #tpu.dot_dimension_numbers<[1], [0], [0], [1], [0, 0, 1, 1], [], []>} : vector<64x16xf32>, vector<16x96xf32>, vector<64x96xf32> -> vector<64x96xf32>
    %145 = vector.extract_strided_slice %144 {offsets = [0, 0], sizes = [64, 48], strides = [1, 1]} : vector<64x96xf32> to vector<64x48xf32>
    %146 = arith.mulf %145, %0 : vector<64x48xf32>
    %147 = vector.extract_strided_slice %144 {offsets = [0, 48], sizes = [64, 48], strides = [1, 1]} : vector<64x96xf32> to vector<64x48xf32>
    %148 = arith.mulf %147, %0 : vector<64x48xf32>
    %cst_87 = arith.constant dense<0.000000e+00> : vector<16x64xf32>
    %149 = tpu.matmul %142, %146, %cst_87 {dimension_numbers = #tpu.dot_dimension_numbers<[1], [1], [0], [0], [0, 0, 1, 0], [], []>} : vector<16x48xf32>, vector<64x48xf32>, vector<16x64xf32> -> vector<16x64xf32>
    %150 = arith.addf %149, %32 : vector<16x64xf32>
    %cst_88 = arith.constant dense<0xFF800000> : vector<16xf32>
    %151 = vector.multi_reduction <maximumf>, %150, %cst_88 [1] : vector<16x64xf32> to vector<16xf32>
    %152 = vector.shape_cast %151 : vector<16xf32> to vector<16x1xf32>
    %153 = vector.broadcast %152 : vector<16x1xf32> to vector<16x64xf32>
    %154 = arith.subf %150, %153 : vector<16x64xf32>
    %155 = math.exp %154 : vector<16x64xf32>
    %cst_89 = arith.constant dense<0.000000e+00> : vector<16x48xf32>
    %156 = tpu.matmul %155, %0, %cst_89 {dimension_numbers = #tpu.dot_dimension_numbers<[1], [0], [0], [1], [0, 0, 1, 1], [], []>} : vector<16x64xf32>, vector<64x48xf32>, vector<16x48xf32> -> vector<16x48xf32>
    %cst_90 = arith.constant dense<0.000000e+00> : vector<16x48xf32>
    %157 = tpu.matmul %155, %148, %cst_90 {dimension_numbers = #tpu.dot_dimension_numbers<[1], [0], [0], [1], [0, 0, 1, 1], [], []>} : vector<16x64xf32>, vector<64x48xf32>, vector<16x48xf32> -> vector<16x48xf32>
    %158 = tpu.reciprocal %156 {approx = true} : vector<16x48xf32> -> vector<16x48xf32>
    %159 = arith.mulf %157, %158 : vector<16x48xf32>
    %c1_91 = arith.constant 1 : index
    %c0_92 = arith.constant 0 : index
    %c0_93 = arith.constant 0 : index
    %160 = vector.load %arg6[%c1_91, %c0_92, %c0_93] : memref<2x112x112xf32, #tpu.memory_space<vmem>>, vector<1x48x48xf32>
    %161 = vector.shape_cast %160 : vector<1x48x48xf32> to vector<48x48xf32>
    %cst_94 = arith.constant dense<0.000000e+00> : vector<16x48xf32>
    %162 = tpu.matmul %159, %161, %cst_94 {dimension_numbers = #tpu.dot_dimension_numbers<[1], [0], [0], [1], [0, 0, 1, 1], [], []>} : vector<16x48xf32>, vector<48x48xf32>, vector<16x48xf32> -> vector<16x48xf32>
    %c1_95 = arith.constant 1 : index
    %c1_96 = arith.constant 1 : index
    %c0_97 = arith.constant 0 : index
    %163 = vector.load %arg7[%c1_95, %c1_96, %c0_97] : memref<2x8x144xf32, #tpu.memory_space<vmem>>, vector<1x1x48xf32>
    %164 = vector.shape_cast %163 : vector<1x1x48xf32> to vector<1x48xf32>
    %165 = vector.broadcast %164 : vector<1x48xf32> to vector<16x48xf32>
    %166 = arith.addf %162, %165 : vector<16x48xf32>
    %167 = arith.addf %134, %166 : vector<16x48xf32>
    %c1_98 = arith.constant 1 : index
    %c4_99 = arith.constant 4 : index
    %c0_100 = arith.constant 0 : index
    %168 = vector.load %arg7[%c1_98, %c4_99, %c0_100] : memref<2x8x144xf32, #tpu.memory_space<vmem>>, vector<1x1x48xf32>
    %169 = vector.shape_cast %168 : vector<1x1x48xf32> to vector<1x48xf32>
    %c1_101 = arith.constant 1 : index
    %c5_102 = arith.constant 5 : index
    %c0_103 = arith.constant 0 : index
    %170 = vector.load %arg7[%c1_101, %c5_102, %c0_103] : memref<2x8x144xf32, #tpu.memory_space<vmem>>, vector<1x1x48xf32>
    %171 = vector.shape_cast %170 : vector<1x1x48xf32> to vector<1x48xf32>
    %cst_104 = arith.constant dense<0.000000e+00> : vector<16xf32>
    %172 = vector.multi_reduction <add>, %167, %cst_104 [1] : vector<16x48xf32> to vector<16xf32>
    %173 = vector.shape_cast %172 : vector<16xf32> to vector<16x1xf32>
    %cst_105 = arith.constant 4.800000e+01 : f32
    %174 = vector.broadcast %cst_105 : f32 to vector<16x1xf32>
    %175 = arith.divf %173, %174 : vector<16x1xf32>
    %176 = vector.broadcast %175 : vector<16x1xf32> to vector<16x48xf32>
    %177 = arith.subf %167, %176 : vector<16x48xf32>
    %178 = arith.mulf %177, %177 : vector<16x48xf32>
    %cst_106 = arith.constant dense<0.000000e+00> : vector<16xf32>
    %179 = vector.multi_reduction <add>, %178, %cst_106 [1] : vector<16x48xf32> to vector<16xf32>
    %180 = vector.shape_cast %179 : vector<16xf32> to vector<16x1xf32>
    %cst_107 = arith.constant 4.800000e+01 : f32
    %181 = vector.broadcast %cst_107 : f32 to vector<16x1xf32>
    %182 = arith.divf %180, %181 : vector<16x1xf32>
    %183 = vector.broadcast %175 : vector<16x1xf32> to vector<16x48xf32>
    %184 = arith.subf %167, %183 : vector<16x48xf32>
    %cst_108 = arith.constant 9.99999974E-6 : f32
    %185 = vector.broadcast %cst_108 : f32 to vector<16x1xf32>
    %186 = arith.addf %182, %185 : vector<16x1xf32>
    %187 = math.rsqrt %186 : vector<16x1xf32>
    %188 = vector.broadcast %187 : vector<16x1xf32> to vector<16x48xf32>
    %189 = arith.mulf %184, %188 : vector<16x48xf32>
    %190 = vector.broadcast %169 : vector<1x48xf32> to vector<16x48xf32>
    %191 = arith.mulf %189, %190 : vector<16x48xf32>
    %192 = vector.broadcast %171 : vector<1x48xf32> to vector<16x48xf32>
    %193 = arith.addf %191, %192 : vector<16x48xf32>
    %c1_109 = arith.constant 1 : index
    %c0_110 = arith.constant 0 : index
    %c48_111 = arith.constant 48 : index
    %194 = vector.load %arg6[%c1_109, %c0_110, %c48_111] : memref<2x112x112xf32, #tpu.memory_space<vmem>>, vector<1x48x64xf32>
    %195 = vector.shape_cast %194 : vector<1x48x64xf32> to vector<48x64xf32>
    %cst_112 = arith.constant dense<0.000000e+00> : vector<16x64xf32>
    %196 = tpu.matmul %193, %195, %cst_112 {dimension_numbers = #tpu.dot_dimension_numbers<[1], [0], [0], [1], [0, 0, 1, 1], [], []>} : vector<16x48xf32>, vector<48x64xf32>, vector<16x64xf32> -> vector<16x64xf32>
    %c1_113 = arith.constant 1 : index
    %c2_114 = arith.constant 2 : index
    %c0_115 = arith.constant 0 : index
    %197 = vector.load %arg7[%c1_113, %c2_114, %c0_115] : memref<2x8x144xf32, #tpu.memory_space<vmem>>, vector<1x1x64xf32>
    %198 = vector.shape_cast %197 : vector<1x1x64xf32> to vector<1x64xf32>
    %199 = vector.broadcast %198 : vector<1x64xf32> to vector<16x64xf32>
    %200 = arith.addf %196, %199 : vector<16x64xf32>
    %cst_116 = arith.constant 0.000000e+00 : f32
    %201 = vector.broadcast %cst_116 : f32 to vector<16x64xf32>
    %202 = arith.maximumf %200, %201 : vector<16x64xf32>
    %c1_117 = arith.constant 1 : index
    %c48_118 = arith.constant 48 : index
    %c0_119 = arith.constant 0 : index
    %203 = vector.load %arg6[%c1_117, %c48_118, %c0_119] : memref<2x112x112xf32, #tpu.memory_space<vmem>>, vector<1x64x48xf32>
    %204 = vector.shape_cast %203 : vector<1x64x48xf32> to vector<64x48xf32>
    %cst_120 = arith.constant dense<0.000000e+00> : vector<16x48xf32>
    %205 = tpu.matmul %202, %204, %cst_120 {dimension_numbers = #tpu.dot_dimension_numbers<[1], [0], [0], [1], [0, 0, 1, 1], [], []>} : vector<16x64xf32>, vector<64x48xf32>, vector<16x48xf32> -> vector<16x48xf32>
    %c1_121 = arith.constant 1 : index
    %c3_122 = arith.constant 3 : index
    %c0_123 = arith.constant 0 : index
    %206 = vector.load %arg7[%c1_121, %c3_122, %c0_123] : memref<2x8x144xf32, #tpu.memory_space<vmem>>, vector<1x1x48xf32>
    %207 = vector.shape_cast %206 : vector<1x1x48xf32> to vector<1x48xf32>
    %208 = vector.broadcast %207 : vector<1x48xf32> to vector<16x48xf32>
    %209 = arith.addf %205, %208 : vector<16x48xf32>
    %210 = arith.addf %193, %209 : vector<16x48xf32>
    %c1_124 = arith.constant 1 : index
    %c6_125 = arith.constant 6 : index
    %c0_126 = arith.constant 0 : index
    %211 = vector.load %arg7[%c1_124, %c6_125, %c0_126] : memref<2x8x144xf32, #tpu.memory_space<vmem>>, vector<1x1x48xf32>
    %212 = vector.shape_cast %211 : vector<1x1x48xf32> to vector<1x48xf32>
    %c1_127 = arith.constant 1 : index
    %c7_128 = arith.constant 7 : index
    %c0_129 = arith.constant 0 : index
    %213 = vector.load %arg7[%c1_127, %c7_128, %c0_129] : memref<2x8x144xf32, #tpu.memory_space<vmem>>, vector<1x1x48xf32>
    %214 = vector.shape_cast %213 : vector<1x1x48xf32> to vector<1x48xf32>
    %cst_130 = arith.constant dense<0.000000e+00> : vector<16xf32>
    %215 = vector.multi_reduction <add>, %210, %cst_130 [1] : vector<16x48xf32> to vector<16xf32>
    %216 = vector.shape_cast %215 : vector<16xf32> to vector<16x1xf32>
    %cst_131 = arith.constant 4.800000e+01 : f32
    %217 = vector.broadcast %cst_131 : f32 to vector<16x1xf32>
    %218 = arith.divf %216, %217 : vector<16x1xf32>
    %219 = vector.broadcast %218 : vector<16x1xf32> to vector<16x48xf32>
    %220 = arith.subf %210, %219 : vector<16x48xf32>
    %221 = arith.mulf %220, %220 : vector<16x48xf32>
    %cst_132 = arith.constant dense<0.000000e+00> : vector<16xf32>
    %222 = vector.multi_reduction <add>, %221, %cst_132 [1] : vector<16x48xf32> to vector<16xf32>
    %223 = vector.shape_cast %222 : vector<16xf32> to vector<16x1xf32>
    %cst_133 = arith.constant 4.800000e+01 : f32
    %224 = vector.broadcast %cst_133 : f32 to vector<16x1xf32>
    %225 = arith.divf %223, %224 : vector<16x1xf32>
    %226 = vector.broadcast %218 : vector<16x1xf32> to vector<16x48xf32>
    %227 = arith.subf %210, %226 : vector<16x48xf32>
    %cst_134 = arith.constant 9.99999974E-6 : f32
    %228 = vector.broadcast %cst_134 : f32 to vector<16x1xf32>
    %229 = arith.addf %225, %228 : vector<16x1xf32>
    %230 = math.rsqrt %229 : vector<16x1xf32>
    %231 = vector.broadcast %230 : vector<16x1xf32> to vector<16x48xf32>
    %232 = arith.mulf %227, %231 : vector<16x48xf32>
    %233 = vector.broadcast %212 : vector<1x48xf32> to vector<16x48xf32>
    %234 = arith.mulf %232, %233 : vector<16x48xf32>
    %235 = vector.broadcast %214 : vector<1x48xf32> to vector<16x48xf32>
    %236 = arith.addf %234, %235 : vector<16x48xf32>
    %cst_135 = arith.constant dense<0.000000e+00> : vector<16x48xf32>
    %237 = tpu.matmul %5, %236, %cst_135 {dimension_numbers = #tpu.dot_dimension_numbers<[1], [0], [0], [1], [0, 0, 1, 1], [], []>} : vector<16x16xf32>, vector<16x48xf32>, vector<16x48xf32> -> vector<16x48xf32>
    %c0_136 = arith.constant 0 : index
    %c0_137 = arith.constant 0 : index
    %238 = vector.load %arg8[%c0_136, %c0_137] : memref<16x48xf32, #tpu.memory_space<vmem>>, vector<16x48xf32>
    tpu.vector_store %arg8[%c0_136, %c0_137], %237 {strides = array<i32>} : memref<16x48xf32, #tpu.memory_space<vmem>>, vector<16x48xf32>,
    return
  }
}

</mosaic_0001>

<bundles_post_ra>
// kernel: backbone_raindrop_forward.1
= control target key start
LH: loop header
LB: loop body
LE: loop exit
PB: predicated region body
PF: predicated region fallthrough
CT: control target
= control target key end

     0   :  { %v3100_v1 = vmov 0.0   ;;  %vm3101_vm0 = vmmov 0   ;;  %s3102_s13 = smov 96   ;;  %s3854_s0 = inlined_call_operand.vmem [shape: f32[8,64], index: 0, kind: input, shape index: {}]   ;;  %s3855_s1 = inlined_call_operand.vmem [shape: f32[16,16], index: 1, kind: input, shape index: {}]   ;;  %s3856_s2 = inlined_call_operand.vmem [shape: f32[16,64], index: 2, kind: input, shape index: {}]   ;;  %s3857_s3 = inlined_call_operand.vmem [shape: f32[64,184], index: 3, kind: input, shape index: {}]   ;;  %s3858_s4 = inlined_call_operand.vmem [shape: f32[2,65,64], index: 4, kind: input, shape index: {}]   ;;  %s3859_s5 = inlined_call_operand.vmem [shape: f32[2,48,144], index: 5, kind: input, shape index: {}]   ;;  %s3860_s6 = inlined_call_operand.vmem [shape: f32[2,112,112], index: 6, kind: input, shape index: {}]   ;;  %s3861_s7 = inlined_call_operand.vmem [shape: f32[2,8,144], index: 7, kind: input, shape index: {}]   ;;  %s3862_s8 = inlined_call_operand.hbm [shape: f32[16,48], index: 8, kind: output, shape index: {}]  }
   0x1   :  { %v48_v0 = vld [vmem:[%s3858_s4 + $0x38] sm:$0xff]  ;;  %2712 = vmatprep.subr.mxu0 %v3100_v1  ;;  %v47_v2 = vld [vmem:[%s3858_s4 + $0x30] sm:$0xff]  ;;  %2728 = vmatprep.mubr.msk.f32.mxu0 %vm3101_vm0, %v3100_v1  ;;  %v46_v3 = vld [vmem:[%s3858_s4 + $0x28] sm:$0xff] }
   0x2   :  { %2713 = vmatpush3.msra.mxu0 %v48_v0  ;;  %v3171_v4 = vld [vmem:[%s3857_s3 + $0x8] sm:$0xff] }
   0x3   :  { %2714 = vmatprep.subr.mxu0 %v3100_v1  ;;  %131 = vrot.lane.b32.xlu0 %v3171_v4, %s3102_s13 }
   0x4   :  { %2715 = vmatpush3.msra.mxu0 %v47_v2 }
   0x5   :  { %13 = vsyncpa [#allocation3], 0  ;;  %2716 = vmatprep.subr.mxu0 %v3100_v1  ;;  %v45_v5 = vld [vmem:[%s3858_s4 + $0x20] sm:$0xff]  ;;  %v3181_v6 = vld [vmem:[%s3857_s3 + $0x18] sm:$0xff]  ;;  %vm54_vm1 = vcmask 523264   ;;  %vm135_vm2 = vcmask 64512  }
   0x6   :  { %2717 = vmatpush3.msra.mxu0 %v46_v3  ;;  %v44_v7 = vld [vmem:[%s3858_s4 + $0x18] sm:$0xff]  ;;  %v43_v8 = vld [vmem:[%s3858_s4 + $0x10] sm:$0xff]  ;;  %v42_v9 = vld [vmem:[%s3858_s4 + $0x8] sm:$0xff]  ;;  %s3103_s27 = smov 64   ;;  %vm324_vm3 = vcmask 261120   ;;  %vm480_vm4 = vcmask 392192  }
   0x7   :  { %2718 = vmatprep.subr.mxu0 %v3100_v1  ;;  %133 = vrot.lane.b32.xlu0 %v3181_v6, %s3102_s13  ;;  %v41_v10 = vld [vmem:[%s3858_s4] sm:$0xff]  ;;  %v2440_v20 = vld [vmem:[%s3858_s4 + $0x78] sm:$0xff]  ;;  %v2439_v21 = vld [vmem:[%s3858_s4 + $0x70] sm:$0xff]  ;;  %s3104_s13 = smov 32   ;;  %s3105_s25 = smov 80   ;;  %vm592_vm5 = vcmask 654336  }
   0x8   :  { %2719 = vmatpush3.msra.mxu0 %v45_v5  ;;  %v40_v11 = vld [vmem:[%s3854_s0] sm:$0xff]  ;;  %v2438_v22 = vld [vmem:[%s3858_s4 + $0x68] sm:$0xff]  ;;  %v2436_v24 = vld [vmem:[%s3858_s4 + $0x58] sm:$0xff]  ;;  %s3106_s26 = smov 48   ;;  %vm597_vm6 = vcmask 130048   ;;  %s3107_s24 = smov 88  }
   0x9   :  { %2720 = vmatprep.subr.mxu0 %v3100_v1  ;;  %v2430_v13 = vld [vmem:[%s3858_s4 + $0x40] ss:$0 sm:$0xff]  ;;  %v2435_v25 = vld [vmem:[%s3858_s4 + $0x50] sm:$0xff]  ;;  %v2434_v26 = vld [vmem:[%s3858_s4 + $0x48] sm:$0xff] }
   0xa   :  { %2721 = vmatpush3.msra.mxu0 %v44_v7  ;;  %v2441_v19 = vld [vmem:[%s3858_s4 + $0x80] sm:$0xff]  ;;  %v3235_v27 = vld [vmem:[%s3857_s3 + $0x70] sm:$0xff]  ;;  %v443_v49 = vld [vmem:[%s3855_s1 + $0x8] sm:$0xff] }
   0xb   :  { %2722 = vmatprep.subr.mxu0 %v3100_v1  ;;  %v2437_v23 = vld [vmem:[%s3858_s4 + $0x60] sm:$0xff]  ;;  %v3240_v28 = vld [vmem:[%s3857_s3 + $0x50] sm:$0xff]  ;;  %351 = vrot.lane.b32.xlu1 %v3235_v27, %s3103_s27  ;;  %v467_v51 = vld [vmem:[%s3859_s5 + $0x58] sm:$0xff] }
   0xc   :  { %2723 = vmatpush3.msra.mxu0 %v43_v8  ;;  %347 = vrot.lane.b32.xlu0 %v3240_v28, %s3103_s27  ;;  %v3247_v29 = vld [vmem:[%s3857_s3 + $0x60] sm:$0xff]  ;;  %v3252_v30 = vld [vmem:[%s3857_s3 + $0x30] sm:$0xff]  ;;  %v465_v53 = vld [vmem:[%s3859_s5 + $0x48] sm:$0xff] }
   0xd   :  { %2724 = vmatprep.subr.mxu0 %v3100_v1  ;;  %v3259_v31 = vld [vmem:[%s3857_s3 + $0x40] sm:$0xff]  ;;  %v3277_v34 = vld [vmem:[%s3857_s3 + $0x10] sm:$0xff]  ;;  %v463_v55 = vld [vmem:[%s3859_s5 + $0x38] sm:$0xff] }
   0xe   :  { %2725 = vmatpush3.msra.mxu0 %v42_v9  ;;  %v3264_v32 = vld [vmem:[%s3857_s3] sm:$0xff]  ;;  %v466_v52 = vld [vmem:[%s3859_s5 + $0x50] sm:$0xff]  ;;  %v461_v57 = vld [vmem:[%s3859_s5 + $0x28] sm:$0xff] }
   0xf   :  { %2726 = vmatprep.subr.mxu0 %v3100_v1  ;;  %349 = vrot.lane.b32.xlu1 %v3247_v29, %s3103_s27  ;;  %v3272_v33 = vld [vmem:[%s3857_s3 + $0x20] sm:$0xff]  ;;  %v462_v56 = vld [vmem:[%s3859_s5 + $0x30] sm:$0xff]  ;;  %v459_v59 = vld [vmem:[%s3859_s5 + $0x18] sm:$0xff] }
  0x10   :  { %2727 = vmatpush3.msra.mxu0 %v41_v10  ;;  %343 = vrot.lane.b32.xlu0 %v3252_v30, %s3103_s27  ;;  %v442_v50 = vld [vmem:[%s3855_s1] sm:$0xff]  ;;  %v2443_v60 = vld [vmem:[%s3858_s4 + $0x88] ss:$0 sm:$0xff]  ;;  %v458_v10 = vld [vmem:[%s3859_s5 + $0x10] sm:$0xff] }
  0x11   :  { %2729 = vmatmul.mubr.msk.f32.vlgmr.msra.gmra.mxu0 %vm54_vm1, %v40_v11  ;;  %v464_v54 = vld [vmem:[%s3859_s5 + $0x40] sm:$0xff]  ;;  %v457_v11 = vld [vmem:[%s3859_s5 + $0x8] sm:$0xff] }
  0x12   :  { %v460_v58 = vld [vmem:[%s3859_s5 + $0x20] sm:$0xff] }
  0x13   :  { %345 = vrot.lane.b32.xlu1 %v3259_v31, %s3103_s27 }
  0x14   :  { %316 = vrot.lane.b32.xlu0 %v3264_v32, %s3104_s13 }
  0x17   :  { %341 = vrot.lane.b32.xlu1 %v3272_v33, %s3103_s27 }
  0x18   :  { %339 = vrot.lane.b32.xlu0 %v3277_v34, %s3103_s27 }
  0x1b   :  { %318 = vrot.lane.b32.xlu1 %v3171_v4, %s3104_s13 }
  0x1c   :  { %322 = vrot.lane.b32.xlu0 %v3181_v6, %s3104_s13 }
  0x1f   :  { %320 = vrot.lane.b32.xlu1 %v3277_v34, %s3104_s13 }
  0x20   :  { %446 = vrot.lane.b32.xlu0 %v442_v50, %s3104_s13 }
  0x23   :  { %337 = vrot.lane.b32.xlu1 %v3264_v32, %s3103_s27 }
  0x27   :  { %448 = vrot.lane.b32.xlu1 %v443_v49, %s3104_s13 }
  0x75   :  { %v132_v12 = vpop.permute.xlu0 %131 }
  0x76   :  { %2733 = vmatprep.mubr.msk.f32.mxu1 %vm135_vm2, %v132_v12  ;;  %v456_v12 = vld [vmem:[%s3859_s5] sm:$0xff] }
  0x79   :  { %v134_v18 = vpop.permute.xlu0 %133 }
  0x7d   :  { %v352_v35 = vpop.permute.xlu1 %351 }
  0x7e   :  { %2755 = vmatprep.subr.mxu0 %v352_v35  ;;  %v348_v36 = vpop.permute.xlu0 %347 }
  0x7f   :  { %2756 = vmatpush3.msra.mxu0 %v352_v35 }
  0x81   :  { %v350_v37 = vpop.permute.xlu1 %349 }
  0x82   :  { %2757 = vmatprep.subr.mxu0 %v350_v37  ;;  %v344_v39 = vpop.permute.xlu0 %343 }
  0x83   :  { %2758 = vmatpush3.msra.mxu0 %v350_v37 }
  0x84   :  { %2759 = vmatprep.subr.mxu0 %v348_v36 }
  0x85   :  { %2760 = vmatpush3.msra.mxu0 %v348_v36  ;;  %v346_v38 = vpop.permute.xlu1 %345 }
  0x86   :  { %2761 = vmatprep.subr.mxu0 %v346_v38  ;;  %v317_v43 = vpop.permute.xlu0 %316 }
  0x87   :  { %2762 = vmatpush3.msra.mxu0 %v346_v38 }
  0x88   :  { %2763 = vmatprep.subr.mxu0 %v344_v39 }
  0x89   :  { %2764 = vmatpush3.msra.mxu0 %v344_v39  ;;  %v342_v42 = vpop.permute.xlu1 %341 }
  0x8a   :  { %2765 = vmatprep.subr.mxu0 %v342_v42  ;;  %v340_v46 = vpop.permute.xlu0 %339 }
  0x8b   :  { %2766 = vmatpush3.msra.mxu0 %v342_v42 }
  0x8c   :  { %2767 = vmatprep.subr.mxu0 %v340_v46 }
  0x8d   :  { %v319_v44 = vpop.permute.xlu1 %318  ;;  %2768 = vmatpush3.msra.mxu0 %v340_v46 }
  0x8e   :  { %v325_v45 = vsel %vm324_vm3, %v317_v43, %v319_v44  ;;  %v323_v3 = vpop.permute.xlu0 %322 }
  0x91   :  { %v321_v47 = vpop.permute.xlu1 %320 }
  0x92   :  { %v326_v7 = vsel %vm324_vm3, %v321_v47, %v323_v3 }
  0x95   :  { %v338_v48 = vpop.permute.xlu1 %337 }
  0x96   :  { %2769 = vmatprep.subr.mxu0 %v338_v48 }
  0x97   :  { %2770 = vmatpush3.msra.mxu0 %v338_v48 }
  0x98   :  { %2809 = vmatprep.subr.mxu0 %v3235_v27 }
  0xd1   :  { %v124_v14 = vpop.f32.mrf.mxu0 }
  0xd2   :  { %v125_v15 = vadd.f32 %v2430_v13, %v124_v14  ;;  %v447_v14 = vpop.permute.xlu0 %446 }
  0xd3   :  { %v2730_v16 = vpop.f32.mrf.mxu0 }
  0xd4   :  { %v128_v17 = vmax.f32 %v125_v15, 0.0 }
  0xd6   :  { %2731 = vmatprep.subr.mxu1 %v128_v17 }
  0xd7   :  { %2732 = vmatpush3.msra.mxu1 %v128_v17  ;;  %v449_v17 = vpop.permute.xlu1 %448 }
  0xd8   :  { %2734 = vmatmul.mubr.msk.f32.vlgmr.msra.gmra.mxu1 %vm135_vm2, %v134_v18  ;;  %2736 = vmatprep.subr.mxu1 %v2441_v19 }
  0xd9   :  { %2737 = vmatpush3.msra.mxu1 %v2441_v19  ;;  %v470_v19 = vlaneseq }
  0xda   :  { %2738 = vmatprep.subr.mxu1 %v2440_v20 }
  0xdb   :  { %2739 = vmatpush3.msra.mxu1 %v2440_v20  ;;  %v3369_v20 = vshrl.u32 %v470_v19, 7 }
  0xdc   :  { %2740 = vmatprep.subr.mxu1 %v2439_v21 }
  0xdd   :  { %2741 = vmatpush3.msra.mxu1 %v2439_v21  ;;  %v472_v21 = vsub.s32 0, %v3369_v20 }
  0xde   :  { %2742 = vmatprep.subr.mxu1 %v2438_v22 }
  0xdf   :  { %2743 = vmatpush3.msra.mxu1 %v2438_v22  ;;  %v468_v22 = vld [vmem:[%s3861_s7] ss:$8 sm:$0x3] }
  0xe0   :  { %2744 = vmatprep.subr.mxu1 %v2437_v23 }
  0xe1   :  { %2745 = vmatpush3.msra.mxu1 %v2437_v23  ;;  %v473_v23 = vrot.slane %v468_v22, %v472_v21 }
  0xe2   :  { %2746 = vmatprep.subr.mxu1 %v2436_v24 }
  0xe3   :  { %2747 = vmatpush3.msra.mxu1 %v2436_v24 }
  0xe4   :  { %2748 = vmatprep.subr.mxu1 %v2435_v25 }
  0xe5   :  { %2749 = vmatpush3.msra.mxu1 %v2435_v25 }
  0xe6   :  { %2750 = vmatprep.subr.mxu1 %v2434_v26 }
  0xe7   :  { %2751 = vmatpush3.msra.mxu1 %v2434_v26  ;;  %v476_v26 = vsub.s32 1, %v3369_v20 }
  0xe8   :  { %507 = vmatprep.subr.mxu1 %v467_v51 }
  0xe9   :  { %v477_v37 = vrot.slane %v468_v22, %v476_v26 }
 0x198   :  { %v2735_v40 = vpop.f32.mrf.mxu1 }
 0x19a   :  { %v206_v41 = vpop.f32.mrf.mxu1 }
 0x19b   :  { %2752 = vmatprep.mubr.msk.f32.mxu1 %vm54_vm1, %v206_v41 }
 0x19c   :  { %2753 = vmatmul.mubr.msk.f32.vlgmr.msra.gmra.mxu1 %vm54_vm1, %v2735_v40 }
 0x19d   :  { %551 = vmatprep.mubr.f32.mxu1 %v3100_v1  ;;  %508 = vmatpush1.msra.mxu1 %v466_v52 }
 0x19e   :  { %509 = vmatprep.subr.mxu1 %v465_v53 }
 0x19f   :  { %510 = vmatpush1.msra.mxu1 %v464_v54 }
 0x1a0   :  { %511 = vmatprep.subr.mxu1 %v463_v55 }
 0x1a1   :  { %512 = vmatpush1.msra.mxu1 %v462_v56 }
 0x1a2   :  { %513 = vmatprep.subr.mxu1 %v461_v57 }
 0x1a3   :  { %514 = vmatpush1.msra.mxu1 %v460_v58 }
 0x1a4   :  { %515 = vmatprep.subr.mxu1 %v459_v59 }
 0x1a5   :  { %516 = vmatpush1.msra.mxu1 %v458_v10 }
 0x1a6   :  { %517 = vmatprep.subr.mxu1 %v457_v11 }
 0x1a7   :  { %518 = vmatpush1.msra.mxu1 %v456_v12 }
 0x25c   :  { %v2754_v61 = vpop.f32.mrf.mxu1 }
 0x25d   :  { %v307_v62 = vadd.f32 %v2754_v61, %v2443_v60 }
 0x25e   :  { %v301_v63 = vpop.f32.mrf.mxu1 }
 0x25f   :  { %v311_v0 = vmax.f32 %v307_v62, 0.0  ;;  %v302_v2 = vadd.f32 %v2443_v60, %v301_v63 }
 0x261   :  { %v310_v4 = vmax.f32 %v302_v2, 0.0  ;;  %v313_v5 = vmul.f32 4.0, %v311_v0 }
 0x263   :  { %v312_v6 = vmul.f32 4.0, %v310_v4  ;;  %v330_v9 = vmul.f32 %v326_v7, %v313_v5 }
 0x265   :  { %v329_v8 = vmul.f32 %v325_v45, %v312_v6 }
 0x267   :  { %2771 = vmatprep.mubr.msk.f32.mxu0 %vm54_vm1, %v329_v8 }
 0x268   :  { %2772 = vmatmul.mubr.msk.f32.vlgmr.msra.gmra.mxu0 %vm54_vm1, %v330_v9 }
 0x269   :  { %2810 = vmatpush3.msra.mxu0 %v3235_v27 }
 0x26a   :  { %2811 = vmatprep.subr.mxu0 %v3247_v29 }
 0x26b   :  { %2812 = vmatpush3.msra.mxu0 %v3247_v29 }
 0x26c   :  { %2813 = vmatprep.subr.mxu0 %v3240_v28 }
 0x26d   :  { %2814 = vmatpush3.msra.mxu0 %v3240_v28 }
 0x26e   :  { %2815 = vmatprep.subr.mxu0 %v3259_v31 }
 0x26f   :  { %2816 = vmatpush3.msra.mxu0 %v3259_v31 }
 0x270   :  { %2817 = vmatprep.subr.mxu0 %v3252_v30 }
 0x271   :  { %2818 = vmatpush3.msra.mxu0 %v3252_v30 }
 0x272   :  { %2819 = vmatprep.subr.mxu0 %v3272_v33 }
 0x273   :  { %2820 = vmatpush3.msra.mxu0 %v3272_v33 }
 0x274   :  { %2821 = vmatprep.subr.mxu0 %v3277_v34 }
 0x275   :  { %2822 = vmatpush3.msra.mxu0 %v3277_v34 }
 0x276   :  { %2823 = vmatprep.subr.mxu0 %v3264_v32 }
 0x277   :  { %2824 = vmatpush3.msra.mxu0 %v3264_v32 }
 0x328   :  { %v2773_v13 = vpop.f32.mrf.mxu0 }
 0x329   :  { %v3365_v18 = vsel %vm324_vm3, %v2773_v13, %v449_v17 }
 0x32a   :  { %v433_v15 = vpop.f32.mrf.mxu0 }
 0x32b   :  { %v3359_v16 = vsel %vm324_vm3, %v433_v15, %v447_v14 }
 0x32c   :  { %2448 = vmatmul.mubr.msk.f32.vlgmr.msra.gmra.mxu1 %vm480_vm4, %v3359_v16 }
 0x32d   :  { %557 = vmatprep.mubr.f32.mxu1 %v3100_v1 }
 0x330   :  { %2449 = vmatmul.mubr.msk.f32.gmra.mxu1 %vm480_vm4, %v3365_v18 }
 0x3ec   :  { %v553_v24 = vpop.f32.mrf.mxu1 }
 0x3ed   :  { %v554_v25 = vadd.f32 %v553_v24, %v473_v23 }
 0x3ee   :  { %v555_v35 = vpop.f32.mrf.mxu1 }
 0x3ef   :  { %584 = vrot.lane.b32.xlu0 %v554_v25, %s3105_s25  ;;  %v556_v41 = vadd.f32 %v555_v35, %v477_v37 }
 0x3f0   :  { %v559_v36 = vpop.f32.mrf.mxu1 }
 0x3f1   :  { %v3381_v38 = vadd.f32 %v559_v36, %v473_v23 }
 0x3f2   :  { %v561_v39 = vpop.f32.mrf.mxu1 }
 0x3f3   :  { %v562_v40 = vadd.f32 %v561_v39, %v477_v37  ;;  %588 = vrot.lane.b32.xlu0 %v3381_v38, %s3105_s25 }
 0x3f5   :  { %590 = vrot.lane.b32.xlu1 %v562_v40, %s3105_s25 }
 0x3f7   :  { %564 = vrot.lane.b32.xlu0 %v3264_v32, %s3105_s25 }
 0x3f9   :  { %586 = vrot.lane.b32.xlu1 %v556_v41, %s3105_s25 }
 0x3fb   :  { %568 = vrot.lane.b32.xlu0 %v3272_v33, %s3105_s25 }
 0x3fd   :  { %566 = vrot.lane.b32.xlu1 %v3277_v34, %s3105_s25 }
 0x3ff   :  { %572 = vrot.lane.b32.xlu0 %v3259_v31, %s3105_s25 }
 0x401   :  { %570 = vrot.lane.b32.xlu1 %v3252_v30, %s3105_s25 }
 0x403   :  { %576 = vrot.lane.b32.xlu0 %v3247_v29, %s3105_s25 }
 0x405   :  { %574 = vrot.lane.b32.xlu1 %v3240_v28, %s3105_s25 }
 0x407   :  { %741 = vrot.lane.b32.xlu0 %v3235_v27, %s3106_s26 }
 0x409   :  { %578 = vrot.lane.b32.xlu1 %v3235_v27, %s3105_s25 }
 0x40b   :  { %737 = vrot.lane.b32.xlu0 %v3240_v28, %s3106_s26 }
 0x40d   :  { %739 = vrot.lane.b32.xlu1 %v3247_v29, %s3106_s26 }
 0x40f   :  { %733 = vrot.lane.b32.xlu0 %v3252_v30, %s3106_s26 }
 0x411   :  { %735 = vrot.lane.b32.xlu1 %v3259_v31, %s3106_s26 }
 0x413   :  { %729 = vrot.lane.b32.xlu0 %v3277_v34, %s3106_s26 }
 0x415   :  { %731 = vrot.lane.b32.xlu1 %v3272_v33, %s3106_s26 }
 0x419   :  { %727 = vrot.lane.b32.xlu1 %v3264_v32, %s3106_s26 }
 0x461   :  { %v585_v42 = vpop.permute.xlu0 %584 }
 0x465   :  { %v589_v43 = vpop.permute.xlu0 %588 }
 0x467   :  { %v591_v44 = vpop.permute.xlu1 %590 }
 0x468   :  { %v594_v45 = vsel %vm592_vm5, %v589_v43, %v591_v44 }
 0x469   :  { %2774 = vmatprep.subr.mxu1 %v594_v45  ;;  %v3412_v46 = vpop.permute.xlu0 %564 }
 0x46a   :  { %2775 = vmatpush3.msra.mxu1 %v594_v45  ;;  %2778 = vmatprep.mubr.msk.f32.mxu1 %vm597_vm6, %v3412_v46 }
 0x46b   :  { %v587_v47 = vpop.permute.xlu1 %586 }
 0x46c   :  { %v593_v48 = vsel %vm592_vm5, %v585_v42, %v587_v47 }
 0x46d   :  { %2776 = vmatprep.subr.mxu1 %v593_v48  ;;  %v3417_v49 = vpop.permute.xlu0 %568 }
 0x46e   :  { %2777 = vmatpush3.msra.mxu1 %v593_v48 }
 0x46f   :  { %v3419_v50 = vpop.permute.xlu1 %566 }
 0x470   :  { %2779 = vmatmul.mubr.msk.f32.vlgmr.msra.gmra.mxu1 %vm597_vm6, %v3419_v50 }
 0x471   :  { %2781 = vmatprep.mubr.msk.f32.mxu1 %vm597_vm6, %v3417_v49  ;;  %v3425_v51 = vpop.permute.xlu0 %572 }
 0x473   :  { %v3427_v52 = vpop.permute.xlu1 %570 }
 0x474   :  { %2782 = vmatmul.mubr.msk.f32.gmra.mxu1 %vm597_vm6, %v3427_v52 }
 0x475   :  { %2784 = vmatprep.mubr.msk.f32.mxu1 %vm597_vm6, %v3425_v51  ;;  %v3433_v53 = vpop.permute.xlu0 %576 }
 0x477   :  { %v3435_v54 = vpop.permute.xlu1 %574 }
 0x478   :  { %2785 = vmatmul.mubr.msk.f32.gmra.mxu1 %vm597_vm6, %v3435_v54 }
 0x479   :  { %2787 = vmatprep.mubr.msk.f32.mxu1 %vm597_vm6, %v3433_v53  ;;  %v3493_v11 = vpop.permute.xlu0 %741 }
 0x47b   :  { %v3441_v55 = vpop.permute.xlu1 %578 }
 0x47c   :  { %2788 = vmatmul.mubr.msk.f32.gmra.mxu1 %vm597_vm6, %v3441_v55 }
 0x47d   :  { %2806 = vmatprep.mubr.msk.f32.mxu1 %vm480_vm4, %v554_v25  ;;  %v3499_v14 = vpop.permute.xlu0 %737 }
 0x47f   :  { %v3489_v9 = vpop.permute.xlu1 %739 }
 0x481   :  { %v3508_v23 = vpop.permute.xlu0 %733 }
 0x483   :  { %v3491_v10 = vpop.permute.xlu1 %735 }
 0x485   :  { %v3516_v36 = vpop.permute.xlu0 %729 }
 0x487   :  { %v3497_v13 = vpop.permute.xlu1 %731 }
 0x48b   :  { %v3505_v22 = vpop.permute.xlu1 %727 }
 0x530   :  { %v3446_v56 = vpop.f32.mrf.mxu1 }
 0x531   :  { %v752_v37 = vmul.f32 %v3446_v56, %v3516_v36 }
 0x532   :  { %v680_v57 = vpop.f32.mrf.mxu1 }
 0x533   :  { %v751_v25 = vmul.f32 %v3505_v22, %v680_v57 }
 0x534   :  { %v2783_v58 = vpop.f32.mrf.mxu1 }
 0x535   :  { %v754_v35 = vmul.f32 %v2783_v58, %v3508_v23 }
 0x536   :  { %v690_v59 = vpop.f32.mrf.mxu1 }
 0x537   :  { %v753_v19 = vmul.f32 %v3497_v13, %v690_v59 }
 0x538   :  { %v2786_v60 = vpop.f32.mrf.mxu1 }
 0x539   :  { %v724_v3 = vmul.f32 %v2786_v60, %v3240_v28  ;;  %v720_v28 = vmul.f32 %v3446_v56, %v3277_v34  ;;  %v3483_v34 = vld [vmem:[%s3856_s2] sm:$0xff]  ;;  %v756_v24 = vmul.f32 %v2786_v60, %v3499_v14 }
 0x53a   :  { %v700_v61 = vpop.f32.mrf.mxu1 }
 0x53b   :  { %v723_v4 = vmul.f32 %v700_v61, %v3259_v31  ;;  %v719_v31 = vmul.f32 %v680_v57, %v3264_v32  ;;  %v755_v15 = vmul.f32 %v3491_v10, %v700_v61 }
 0x53c   :  { %v2789_v62 = vpop.f32.mrf.mxu1 }
 0x53d   :  { %v726_v63 = vmul.f32 %v2789_v62, %v3235_v27  ;;  %v722_v27 = vmul.f32 %v2783_v58, %v3252_v30  ;;  %v3478_v30 = vld [vmem:[%s3856_s2 + $0x8] sm:$0xff]  ;;  %v758_v17 = vmul.f32 %v2789_v62, %v3493_v11  ;;  %s3108_s2 = smov [#allocation2]  }
 0x53e   :  { %v710_v0 = vpop.f32.mrf.mxu1  ;;  %v1071_v62 = vld [vmem:[%s3860_s6 + $0x28] sm:$0xff]  ;;  %s2419_s30 = sshll.u32 %s3108_s2, 4  ;;  %s2420_s30 = int_to_ptr.vmem [resolvable:$true] %s2419_s30 }
 0x53f   :  { %v725_v2 = vmul.f32 %v710_v0, %v3247_v29  ;;  %2790 = vmatprep.subr.msk.mxu1 %vm480_vm4, %v726_v63  ;;  %v721_v29 = vmul.f32 %v690_v59, %v3272_v33  ;;  %v757_v12 = vmul.f32 %v3489_v9, %v710_v0  ;;  %v1069_v0 = vld [vmem:[%s3860_s6 + $0x18] sm:$0xff]  ;;  %p3083_p1 = scmp.lt.s32.totalorder %s2420_s30, %s2420_s30 }
 0x540   :  { %2791 = vmatpush3.xpose.msk.msra.mxu1 %vm480_vm4, %v726_v63  ;;  %v1070_v63 = vld [vmem:[%s3860_s6 + $0x20] sm:$0xff] }
 0x541   :  { %2792 = vmatprep.subr.msk.mxu1 %vm480_vm4, %v725_v2 }
 0x544   :  { %2793 = vmatpush3.xpose.msk.msra.mxu1 %vm480_vm4, %v725_v2  ;;  %v1068_v2 = vld [vmem:[%s3860_s6 + $0x10] sm:$0xff] }
 0x545   :  { %2794 = vmatprep.subr.msk.mxu1 %vm480_vm4, %v724_v3 }
 0x548   :  { %2795 = vmatpush3.xpose.msk.msra.mxu1 %vm480_vm4, %v724_v3  ;;  %v1067_v3 = vld [vmem:[%s3860_s6 + $0x8] sm:$0xff] }
 0x549   :  { %2796 = vmatprep.subr.msk.mxu1 %vm480_vm4, %v723_v4 }
 0x54c   :  { %2797 = vmatpush3.xpose.msk.msra.mxu1 %vm480_vm4, %v723_v4  ;;  %v1066_v4 = vld [vmem:[%s3860_s6] sm:$0xff] }
 0x54d   :  { %2798 = vmatprep.subr.msk.mxu1 %vm480_vm4, %v722_v27 }
 0x550   :  { %2799 = vmatpush3.xpose.msk.msra.mxu1 %vm480_vm4, %v722_v27 }
 0x551   :  { %2800 = vmatprep.subr.msk.mxu1 %vm480_vm4, %v721_v29 }
 0x554   :  { %2801 = vmatpush3.xpose.msk.msra.mxu1 %vm480_vm4, %v721_v29 }
 0x555   :  { %2802 = vmatprep.subr.msk.mxu1 %vm480_vm4, %v720_v28 }
 0x558   :  { %2803 = vmatpush3.xpose.msk.msra.mxu1 %vm480_vm4, %v720_v28 }
 0x559   :  { %2804 = vmatprep.subr.msk.mxu1 %vm480_vm4, %v719_v31 }
 0x55c   :  { %2805 = vmatpush3.xpose.msk.msra.mxu1 %vm480_vm4, %v719_v31 }
 0x55d   :  { %2847 = vmatprep.subr.mxu1 %v1071_v62 }
 0x55f   :  { %2807 = vmatmul.mubr.msk.f32.vlgmr.msra.gmra.mxu1 %vm480_vm4, %v3381_v38 }
 0x560   :  { %2848 = vmatpush3.msra.mxu1 %v1071_v62 }
 0x561   :  { %2849 = vmatprep.subr.mxu1 %v1070_v63 }
 0x562   :  { %2850 = vmatpush3.msra.mxu1 %v1070_v63 }
 0x563   :  { %2851 = vmatprep.subr.mxu1 %v1069_v0 }
 0x564   :  { %2852 = vmatpush3.msra.mxu1 %v1069_v0 }
 0x565   :  { %2853 = vmatprep.subr.mxu1 %v1068_v2 }
 0x566   :  { %2854 = vmatpush3.msra.mxu1 %v1068_v2 }
 0x567   :  { %2855 = vmatprep.subr.mxu1 %v1067_v3 }
 0x568   :  { %2856 = vmatpush3.msra.mxu1 %v1067_v3 }
 0x569   :  { %2857 = vmatprep.subr.mxu1 %v1066_v4 }
 0x56a   :  { %2858 = vmatpush3.msra.mxu1 %v1066_v4 }
 0x61f   :  { %v2808_v33 = vpop.f32.mrf.mxu1 }
 0x620   :  { %v859_v32 = vadd.f32 %v2808_v33, %v3478_v30 }
 0x621   :  { %v853_v5 = vpop.f32.mrf.mxu1 }
 0x622   :  { %v854_v6 = vadd.f32 %v853_v5, %v3483_v34  ;;  %v865_v7 = vsel %vm54_vm1, %v859_v32, -inf }
 0x623   :  { %866 = vmax.xlane.f32.xlu1 %v865_v7  ;;  %v1072_v7 = vld [vmem:[%s3861_s7 + $0x1] ss:$0 sm:$0xff] }
 0x624   :  { %v862_v8 = vsel %vm54_vm1, %v854_v6, -inf }
 0x625   :  { %863 = vmax.xlane.f32.xlu0 %v862_v8 }
 0x634   :  { %975 = vrot.lane.b32.xlu1 %v757_v12, %s3105_s25 }
 0x638   :  { %971 = vrot.lane.b32.xlu1 %v755_v15, %s3105_s25 }
 0x63b   :  { %977 = vrot.lane.b32.xlu0 %v758_v17, %s3105_s25 }
 0x63c   :  { %967 = vrot.lane.b32.xlu1 %v753_v19, %s3105_s25 }
 0x63f   :  { %973 = vrot.lane.b32.xlu0 %v756_v24, %s3105_s25 }
 0x640   :  { %963 = vrot.lane.b32.xlu1 %v751_v25, %s3105_s25 }
 0x643   :  { %969 = vrot.lane.b32.xlu0 %v754_v35, %s3105_s25 }
 0x647   :  { %965 = vrot.lane.b32.xlu0 %v752_v37, %s3105_s25 }
 0x6ac   :  { %v867_v38 = vpop.xlane.xlu1 %866 }
 0x6ad   :  { %v869_v39 = vsub.f32 %v859_v32, %v867_v38 }
 0x6ae   :  { %v864_v40 = vpop.xlane.xlu0 %863 }
 0x6af   :  { %v868_v41 = vsub.f32 %v854_v6, %v864_v40  ;;  %v872_v42 = vmul.f32 1.442695, %v869_v39 }
 0x6b0   :  { %v976_v45 = vpop.permute.xlu1 %975 }
 0x6b1   :  { %v870_v43 = vmul.f32 1.442695, %v868_v41 }
 0x6b2   :  { %v978_v44 = vpop.permute.xlu0 %977 }
 0x6b3   :  { %3036 = vpow2.f32 %v870_v43  ;;  %2828 = vmatprep.subr.mxu0 %v978_v44 }
 0x6b4   :  { %3038 = vpow2.f32 %v872_v42  ;;  %v972_v56 = vpop.permute.xlu1 %971 }
 0x6b6   :  { %v974_v57 = vpop.permute.xlu0 %973 }
 0x6b8   :  { %v968_v59 = vpop.permute.xlu1 %967 }
 0x6ba   :  { %v970_v58 = vpop.permute.xlu0 %969 }
 0x6bc   :  { %v964_v61 = vpop.permute.xlu1 %963 }
 0x6be   :  { %v966_v60 = vpop.permute.xlu0 %965 }
 0x6c0   :  { %v3037_v47 = vpop.eup %3036 }
 0x6c1   :  { %v3039_v48 = vpop.eup %3038  ;;  %2825 = vmatprep.mubr.msk.f32.mxu0 %vm54_vm1, %v3037_v47 }
 0x6c2   :  { %2826 = vmatmul.mubr.msk.f32.vlgmr.msra.gmra.mxu0 %vm54_vm1, %v3039_v48 }
 0x6c3   :  { %2829 = vmatpush3.msra.mxu0 %v978_v44  ;;  %2844 = vmatprep.mubr.msk.f32.mxu0 %vm54_vm1, %v3037_v47  ;;  %v1304_v47 = vld [vmem:[%s3860_s6 + $0x68] sm:$0xff] }
 0x6c4   :  { %2830 = vmatprep.subr.mxu0 %v976_v45  ;;  %2877 = vmatprep.subr.mxu1 %v1304_v47 }
 0x6c5   :  { %2831 = vmatpush3.msra.mxu0 %v976_v45 }
 0x6c6   :  { %2832 = vmatprep.subr.mxu0 %v974_v57 }
 0x6c7   :  { %2833 = vmatpush3.msra.mxu0 %v974_v57  ;;  %v1302_v57 = vld [vmem:[%s3860_s6 + $0x58] sm:$0xff] }
 0x6c8   :  { %2834 = vmatprep.subr.mxu0 %v972_v56 }
 0x6c9   :  { %2835 = vmatpush3.msra.mxu0 %v972_v56  ;;  %v1301_v56 = vld [vmem:[%s3860_s6 + $0x50] sm:$0xff] }
 0x6ca   :  { %2836 = vmatprep.subr.mxu0 %v970_v58 }
 0x6cb   :  { %2837 = vmatpush3.msra.mxu0 %v970_v58 }
 0x6cc   :  { %2838 = vmatprep.subr.mxu0 %v968_v59 }
 0x6cd   :  { %2839 = vmatpush3.msra.mxu0 %v968_v59 }
 0x6ce   :  { %2840 = vmatprep.subr.mxu0 %v966_v60 }
 0x6cf   :  { %2841 = vmatpush3.msra.mxu0 %v966_v60 }
 0x6d0   :  { %2842 = vmatprep.subr.mxu0 %v964_v61 }
 0x6d1   :  { %2843 = vmatpush3.msra.mxu0 %v964_v61 }
 0x6d2   :  { %2845 = vmatmul.mubr.msk.f32.vlgmr.msra.gmra.mxu0 %vm54_vm1, %v3039_v48  ;;  %v1303_v48 = vld [vmem:[%s3860_s6 + $0x60] sm:$0xff] }
 0x782   :  { %v2827_v27 = vpop.f32.mrf.mxu0 }
 0x784   :  { %v946_v29 = vpop.f32.mrf.mxu0 }
 0x785   :  { %3040 = vrcp.f32 %v946_v29 }
 0x786   :  { %3042 = vrcp.f32 %v2827_v27 }
 0x792   :  { %v3041_v28 = vpop.eup %3040  ;;  %v2846_v31 = vpop.f32.mrf.mxu0 }
 0x793   :  { %v3043_v33 = vpop.eup %3042 }
 0x794   :  { %v1053_v32 = vpop.f32.mrf.mxu0  ;;  %v1065_v6 = vmul.f32 %v3043_v33, %v2846_v31  ;;  %v1156_v31 = vld [vmem:[%s3861_s7 + $0x4] ss:$0 sm:$0xff] }
 0x795   :  { %v1064_v5 = vmul.f32 %v3041_v28, %v1053_v32 }
 0x797   :  { %2859 = vmatprep.mubr.msk.f32.mxu1 %vm480_vm4, %v1064_v5 }
 0x798   :  { %2860 = vmatmul.mubr.msk.f32.vlgmr.msra.gmra.mxu1 %vm480_vm4, %v1065_v6  ;;  %v1157_v6 = vld [vmem:[%s3861_s7 + $0x5] ss:$0 sm:$0xff] }
 0x799   :  { %2878 = vmatpush3.msra.mxu1 %v1304_v47 }
 0x79a   :  { %2879 = vmatprep.subr.mxu1 %v1303_v48 }
 0x79b   :  { %2880 = vmatpush3.msra.mxu1 %v1303_v48 }
 0x79c   :  { %2881 = vmatprep.subr.mxu1 %v1302_v57 }
 0x79d   :  { %2882 = vmatpush3.msra.mxu1 %v1302_v57 }
 0x79e   :  { %2883 = vmatprep.subr.mxu1 %v1301_v56 }
 0x79f   :  { %2884 = vmatpush3.msra.mxu1 %v1301_v56 }
 0x858   :  { %v2861_v8 = vpop.f32.mrf.mxu1 }
 0x859   :  { %v1151_v12 = vadd.f32 %v2861_v8, %v1072_v7 }
 0x85a   :  { %v1145_v15 = vpop.f32.mrf.mxu1 }
 0x85b   :  { %v1146_v17 = vadd.f32 %v1145_v15, %v1072_v7  ;;  %v1155_v19 = vadd.f32 %v1151_v12, %v3365_v18  ;;  %v1300_v15 = vld [vmem:[%s3860_s6 + $0x48] sm:$0xff] }
 0x85c   :  { %2885 = vmatprep.subr.mxu1 %v1300_v15 }
 0x85d   :  { %v1161_v24 = vsel %vm480_vm4, %v1155_v19, 0.0  ;;  %v1154_v25 = vadd.f32 %v1146_v17, %v3359_v16  ;;  %2886 = vmatpush3.msra.mxu1 %v1300_v15  ;;  %v1299_v17 = vld [vmem:[%s3860_s6 + $0x40] sm:$0xff] }
 0x85e   :  { %1162 = vadd.xlane.f32.xlu1 %v1161_v24  ;;  %2887 = vmatprep.subr.mxu1 %v1299_v17  ;;  %v1297_v24 = vld [vmem:[%s3860_s6 + $0x30] sm:$0xff] }
 0x85f   :  { %v1158_v35 = vsel %vm480_vm4, %v1154_v25, 0.0  ;;  %2888 = vmatpush3.msra.mxu1 %v1299_v17 }
 0x860   :  { %1159 = vadd.xlane.f32.xlu0 %v1158_v35 }
 0x86f   :  { %1206 = vrot.lane.b32.xlu1 %v1071_v62, %s3105_s25 }
 0x873   :  { %1202 = vrot.lane.b32.xlu1 %v1069_v0, %s3105_s25 }
 0x877   :  { %1200 = vrot.lane.b32.xlu1 %v1068_v2, %s3105_s25 }
 0x87b   :  { %1196 = vrot.lane.b32.xlu1 %v1066_v4, %s3105_s25 }
 0x8e7   :  { %v1163_v37 = vpop.xlane.xlu1 %1162 }
 0x8e8   :  { %v1166_v38 = vmul.f32 0.020833334, %v1163_v37 }
 0x8e9   :  { %v1160_v39 = vpop.xlane.xlu0 %1159 }
 0x8ea   :  { %v1168_v18 = vsub.f32 %v1155_v19, %v1166_v38  ;;  %v1165_v40 = vmul.f32 0.020833334, %v1160_v39  ;;  %v1298_v19 = vld [vmem:[%s3860_s6 + $0x38] sm:$0xff] }
 0x8eb   :  { %v1207_v45 = vpop.permute.xlu1 %1206  ;;  %2889 = vmatprep.subr.mxu1 %v1298_v19 }
 0x8ec   :  { %v1167_v41 = vsub.f32 %v1154_v25, %v1165_v40  ;;  %v1170_v42 = vmul.f32 %v1168_v18, %v1168_v18  ;;  %2862 = vmatprep.subr.mxu0 %v1207_v45  ;;  %2890 = vmatpush3.msra.mxu1 %v1298_v19  ;;  %v1189_v25 = vld [vmem:[%s3861_s7 + $0x2] ss:$0 sm:$0xff] }
 0x8ed   :  { %2863 = vmatpush3.msra.mxu0 %v1207_v45  ;;  %2891 = vmatprep.subr.mxu1 %v1297_v24 }
 0x8ee   :  { %v1174_v16 = vsel %vm480_vm4, %v1170_v42, 0.0  ;;  %v1169_v43 = vmul.f32 %v1167_v41, %v1167_v41  ;;  %2892 = vmatpush3.msra.mxu1 %v1297_v24 }
 0x8ef   :  { %1175 = vadd.xlane.f32.xlu0 %v1174_v16  ;;  %v1203_v60 = vpop.permute.xlu1 %1202 }
 0x8f0   :  { %v1171_v44 = vsel %vm480_vm4, %v1169_v43, 0.0 }
 0x8f3   :  { %1172 = vadd.xlane.f32.xlu0 %v1171_v44 }
 0x909   :  { %1204 = vrot.lane.b32.xlu0 %v1070_v63, %s3105_s25 }
 0x90d   :  { %1198 = vrot.lane.b32.xlu0 %v1067_v3, %s3105_s25  ;;  %v1201_v3 = vpop.permute.xlu1 %1200 }
 0x911   :  { %v1197_v27 = vpop.permute.xlu1 %1196 }
 0x978   :  { %v1176_v58 = vpop.xlane.xlu0 %1175 }
 0x979   :  { %v1178_v59 = vmul.f32 0.020833334, %v1176_v58 }
 0x97b   :  { %v1180_v61 = vadd.f32 1e-05, %v1178_v59 }
 0x97c   :  { %v1173_v62 = vpop.xlane.xlu0 %1172 }
 0x97d   :  { %3044 = vrsqrt.f32 %v1180_v61  ;;  %v1177_v63 = vmul.f32 0.020833334, %v1173_v62 }
 0x97f   :  { %v1179_v0 = vadd.f32 1e-05, %v1177_v63 }
 0x980   :  { %v1205_v2 = vpop.permute.xlu0 %1204 }
 0x981   :  { %3046 = vrsqrt.f32 %v1179_v0  ;;  %2864 = vmatprep.subr.mxu0 %v1205_v2 }
 0x982   :  { %2865 = vmatpush3.msra.mxu0 %v1205_v2 }
 0x983   :  { %2866 = vmatprep.subr.mxu0 %v1203_v60 }
 0x984   :  { %2867 = vmatpush3.msra.mxu0 %v1203_v60  ;;  %v1199_v4 = vpop.permute.xlu0 %1198 }
 0x985   :  { %2868 = vmatprep.subr.mxu0 %v1201_v3 }
 0x986   :  { %2869 = vmatpush3.msra.mxu0 %v1201_v3  ;;  %v2489_v3 = vld [vmem:[%s3859_s5 + $0xb8] sm:$0xff] }
 0x987   :  { %2870 = vmatprep.subr.mxu0 %v1199_v4 }
 0x988   :  { %2871 = vmatpush3.msra.mxu0 %v1199_v4  ;;  %v2488_v4 = vld [vmem:[%s3859_s5 + $0xb0] sm:$0xff] }
 0x989   :  { %2872 = vmatprep.subr.mxu0 %v1197_v27 }
 0x98a   :  { %v3045_v29 = vpop.eup %3044  ;;  %2873 = vmatpush3.msra.mxu0 %v1197_v27  ;;  %v2487_v27 = vld [vmem:[%s3859_s5 + $0xa8] sm:$0xff] }
 0x98b   :  { %v1184_v28 = vmul.f32 %v3045_v29, %v1168_v18  ;;  %1473 = vmatprep.subr.mxu0 %v2489_v3  ;;  %v2486_v29 = vld [vmem:[%s3859_s5 + $0xa0] sm:$0xff] }
 0x98d   :  { %v1186_v5 = vmul.f32 %v1184_v28, %v1156_v31  ;;  %v2485_v28 = vld [vmem:[%s3859_s5 + $0x98] sm:$0xff] }
 0x98e   :  { %v3047_v33 = vpop.eup %3046 }
 0x98f   :  { %v1183_v32 = vmul.f32 %v3047_v33, %v1167_v41  ;;  %v1188_v12 = vadd.f32 %v1186_v5, %v1157_v6  ;;  %v1305_v41 = vld [vmem:[%s3861_s7 + $0x3] ss:$0 sm:$0xff]  ;;  %v2483_v33 = vld [vmem:[%s3859_s5 + $0x88] sm:$0xff]  ;;  %v2481_v5 = vld [vmem:[%s3859_s5 + $0x78] sm:$0xff] }
 0x991   :  { %v1185_v7 = vmul.f32 %v1183_v32, %v1156_v31  ;;  %v2484_v31 = vld [vmem:[%s3859_s5 + $0x90] sm:$0xff]  ;;  %v2482_v32 = vld [vmem:[%s3859_s5 + $0x80] sm:$0xff] }
 0x993   :  { %v1187_v8 = vadd.f32 %v1185_v7, %v1157_v6  ;;  %v2480_v6 = vld [vmem:[%s3859_s5 + $0x70] sm:$0xff]  ;;  %v2479_v7 = vld [vmem:[%s3859_s5 + $0x68] sm:$0xff] }
 0x995   :  { %2874 = vmatprep.mubr.msk.f32.mxu0 %vm480_vm4, %v1187_v8 }
 0x996   :  { %2875 = vmatmul.mubr.msk.f32.vlgmr.msra.gmra.mxu0 %vm480_vm4, %v1188_v12 }
 0x997   :  { %1517 = vmatprep.mubr.f32.mxu0 %v3100_v1  ;;  %1474 = vmatpush1.msra.mxu0 %v2488_v4 }
 0x998   :  { %1475 = vmatprep.subr.mxu0 %v2487_v27 }
 0x999   :  { %1476 = vmatpush1.msra.mxu0 %v2486_v29 }
 0x99a   :  { %1477 = vmatprep.subr.mxu0 %v2485_v28 }
 0x99b   :  { %1478 = vmatpush1.msra.mxu0 %v2484_v31 }
 0x99c   :  { %1479 = vmatprep.subr.mxu0 %v2483_v33 }
 0x99d   :  { %1480 = vmatpush1.msra.mxu0 %v2482_v32 }
 0x99e   :  { %1481 = vmatprep.subr.mxu0 %v2481_v5 }
 0x99f   :  { %1482 = vmatpush1.msra.mxu0 %v2480_v6 }
 0x9a0   :  { %1483 = vmatprep.subr.mxu0 %v2479_v7 }
 0xa56   :  { %v2876_v35 = vpop.f32.mrf.mxu0 }
 0xa57   :  { %v1292_v37 = vadd.f32 %v2876_v35, %v1189_v25 }
 0xa58   :  { %v1286_v38 = vpop.f32.mrf.mxu0 }
 0xa59   :  { %v1287_v39 = vadd.f32 %v1286_v38, %v1189_v25  ;;  %v1296_v40 = vmax.f32 %v1292_v37, 0.0  ;;  %v1389_v37 = vld [vmem:[%s3861_s7 + $0x6] ss:$0 sm:$0xff] }
 0xa5b   :  { %v1295_v18 = vmax.f32 %v1287_v39, 0.0  ;;  %v1390_v39 = vld [vmem:[%s3861_s7 + $0x7] ss:$0 sm:$0xff] }
 0xa5d   :  { %2893 = vmatprep.mubr.msk.f32.mxu1 %vm54_vm1, %v1295_v18 }
 0xa5e   :  { %2894 = vmatmul.mubr.msk.f32.vlgmr.msra.gmra.mxu1 %vm54_vm1, %v1296_v40 }
 0xa5f   :  { %2900 = vmatprep.mubr.msk.f32.mxu1 %vm597_vm6, %v3412_v46 }
 0xb1e   :  { %v2895_v42 = vpop.f32.mrf.mxu1 }
 0xb1f   :  { %v1384_v16 = vadd.f32 %v2895_v42, %v1305_v41 }
 0xb20   :  { %v1378_v43 = vpop.f32.mrf.mxu1 }
 0xb21   :  { %v1379_v44 = vadd.f32 %v1378_v43, %v1305_v41  ;;  %v1388_v45 = vadd.f32 %v1384_v16, %v1188_v12 }
 0xb23   :  { %v1394_v47 = vsel %vm480_vm4, %v1388_v45, 0.0  ;;  %v1387_v48 = vadd.f32 %v1379_v44, %v1187_v8  ;;  %v2478_v8 = vld [vmem:[%s3859_s5 + $0x60] sm:$0xff]  ;;  %v2490_v44 = vld [vmem:[%s3861_s7 + $0x10] ss:$8 sm:$0x3] }
 0xb24   :  { %1395 = vadd.xlane.f32.xlu1 %v1394_v47  ;;  %1484 = vmatpush1.msra.mxu0 %v2478_v8 }
 0xb25   :  { %v1391_v57 = vsel %vm480_vm4, %v1387_v48, 0.0 }
 0xb26   :  { %1392 = vadd.xlane.f32.xlu0 %v1391_v57 }
 0xbad   :  { %v1396_v56 = vpop.xlane.xlu1 %1395 }
 0xbae   :  { %v1398_v58 = vmul.f32 0.020833334, %v1396_v56 }
 0xbaf   :  { %v1393_v59 = vpop.xlane.xlu0 %1392 }
 0xbb0   :  { %v1397_v46 = vmul.f32 0.020833334, %v1393_v59  ;;  %v1400_v60 = vsub.f32 %v1388_v45, %v1398_v58  ;;  %v1440_v45 = vrot.slane %v2490_v44, %v472_v21 }
 0xbb2   :  { %v1399_v61 = vsub.f32 %v1387_v48, %v1397_v46  ;;  %v1402_v0 = vmul.f32 %v1400_v60, %v1400_v60 }
 0xbb4   :  { %v1401_v62 = vmul.f32 %v1399_v61, %v1399_v61  ;;  %v1406_v2 = vsel %vm480_vm4, %v1402_v0, 0.0  ;;  %v3068_v0 = vld [vmem:[%s3857_s3 + $0x70] sm:$0xff] }
 0xbb6   :  { %v1403_v63 = vsel %vm480_vm4, %v1401_v62, 0.0 }
 0xbb7   :  { %1404 = vadd.xlane.f32.xlu0 %v1403_v63 }
 0xbbb   :  { %1407 = vadd.xlane.f32.xlu0 %v1406_v2  ;;  %v3069_v2 = vld [vmem:[%s3857_s3 + $0x60] sm:$0xff] }
 0xc40   :  { %v1405_v12 = vpop.xlane.xlu0 %1404 }
 0xc41   :  { %v1409_v15 = vmul.f32 0.020833334, %v1405_v12 }
 0xc43   :  { %v1411_v17 = vadd.f32 1e-05, %v1409_v15 }
 0xc44   :  { %v1408_v19 = vpop.xlane.xlu0 %1407 }
 0xc45   :  { %3048 = vrsqrt.f32 %v1411_v17  ;;  %v1410_v24 = vmul.f32 0.020833334, %v1408_v19 }
 0xc47   :  { %v1412_v25 = vadd.f32 1e-05, %v1410_v24 }
 0xc49   :  { %3050 = vrsqrt.f32 %v1412_v25 }
 0xc52   :  { %v3049_v35 = vpop.eup %3048 }
 0xc53   :  { %v1415_v38 = vmul.f32 %v3049_v35, %v1399_v61 }
 0xc55   :  { %v1417_v18 = vmul.f32 %v1415_v38, %v1389_v37 }
 0xc56   :  { %v3051_v40 = vpop.eup %3050 }
 0xc57   :  { %v3650_v41 = vadd.f32 %v1417_v18, %v1390_v39  ;;  %v1416_v42 = vmul.f32 %v3051_v40, %v1400_v60 }
 0xc59   :  { %2491 = vmatmul.mubr.msk.f32.vlgmr.msra.gmra.mxu0 %vm480_vm4, %v3650_v41  ;;  %v1418_v16 = vmul.f32 %v1416_v42, %v1389_v37 }
 0xc5a   :  { %1523 = vmatprep.mubr.f32.mxu0 %v3100_v1  ;;  %v1444_v1 = vrot.slane %v2490_v44, %v476_v26 }
 0xc5b   :  { %v3655_v43 = vadd.f32 %v1418_v16, %v1390_v39 }
 0xc5d   :  { %2492 = vmatmul.mubr.msk.f32.gmra.mxu0 %vm480_vm4, %v3655_v43 }
 0xd19   :  { %v1519_v47 = vpop.f32.mrf.mxu0 }
 0xd1a   :  { %v1520_v48 = vadd.f32 %v1519_v47, %v1440_v45 }
 0xd1b   :  { %v1521_v57 = vpop.f32.mrf.mxu0 }
 0xd1c   :  { %2928 = vmatprep.mubr.msk.f32.mxu0 %vm480_vm4, %v1520_v48  ;;  %v1522_v21 = vadd.f32 %v1521_v57, %v1444_v1 }
 0xd1d   :  { %v1525_v56 = vpop.f32.mrf.mxu0 }
 0xd1e   :  { %v3667_v58 = vadd.f32 %v1525_v56, %v1440_v45 }
 0xd1f   :  { %v1527_v59 = vpop.f32.mrf.mxu0 }
 0xd20   :  { %v1528_v46 = vadd.f32 %v1527_v59, %v1444_v1  ;;  %1538 = vrot.lane.b32.xlu1 %v3667_v58, %s3105_s25 }
 0xd22   :  { %1540 = vrot.lane.b32.xlu0 %v1528_v46, %s3105_s25  ;;  %v2520_v46 = vld [vmem:[%s3860_s6 + $0x98] sm:$0xff] }
 0xd24   :  { %1534 = vrot.lane.b32.xlu1 %v1520_v48, %s3105_s25 }
 0xd28   :  { %1536 = vrot.lane.b32.xlu1 %v1522_v21, %s3105_s25  ;;  %v2519_v21 = vld [vmem:[%s3860_s6 + $0x90] sm:$0xff] }
 0xd92   :  { %v1539_v60 = vpop.permute.xlu1 %1538 }
 0xd94   :  { %v1541_v61 = vpop.permute.xlu0 %1540 }
 0xd95   :  { %v1543_v62 = vsel %vm592_vm5, %v1539_v60, %v1541_v61  ;;  %v2518_v60 = vld [vmem:[%s3860_s6 + $0x88] sm:$0xff]  ;;  %v2517_v61 = vld [vmem:[%s3860_s6 + $0x80] sm:$0xff] }
 0xd96   :  { %2896 = vmatprep.subr.mxu1 %v1543_v62  ;;  %v1535_v20 = vpop.permute.xlu1 %1534 }
 0xd97   :  { %2897 = vmatpush3.msra.mxu1 %v1543_v62  ;;  %v2516_v62 = vld [vmem:[%s3860_s6 + $0x78] sm:$0xff] }
 0xd9a   :  { %v1537_v26 = vpop.permute.xlu1 %1536 }
 0xd9b   :  { %v1542_v63 = vsel %vm592_vm5, %v1535_v20, %v1537_v26  ;;  %v2515_v20 = vld [vmem:[%s3860_s6 + $0x70] sm:$0xff] }
 0xd9c   :  { %2898 = vmatprep.subr.mxu1 %v1542_v63 }
 0xd9d   :  { %2899 = vmatpush3.msra.mxu1 %v1542_v63 }
 0xd9e   :  { %2901 = vmatmul.mubr.msk.f32.vlgmr.msra.gmra.mxu1 %vm597_vm6, %v3419_v50  ;;  %2931 = vmatprep.subr.mxu1 %v3068_v0  ;;  %v3070_v50 = vld [vmem:[%s3857_s3 + $0x50] sm:$0xff] }
 0xd9f   :  { %2903 = vmatprep.mubr.msk.f32.mxu1 %vm597_vm6, %v3417_v49  ;;  %2932 = vmatpush3.msra.mxu1 %v3068_v0  ;;  %v3071_v49 = vld [vmem:[%s3857_s3 + $0x40] sm:$0xff] }
 0xda0   :  { %2933 = vmatprep.subr.mxu1 %v3069_v2 }
 0xda1   :  { %2934 = vmatpush3.msra.mxu1 %v3069_v2 }
 0xda2   :  { %2904 = vmatmul.mubr.msk.f32.gmra.mxu1 %vm597_vm6, %v3427_v52  ;;  %2935 = vmatprep.subr.mxu1 %v3070_v50  ;;  %v3072_v52 = vld [vmem:[%s3857_s3 + $0x30] sm:$0xff] }
 0xda3   :  { %2906 = vmatprep.mubr.msk.f32.mxu1 %vm597_vm6, %v3425_v51  ;;  %2936 = vmatpush3.msra.mxu1 %v3070_v50  ;;  %v3073_v51 = vld [vmem:[%s3857_s3 + $0x20] sm:$0xff] }
 0xda4   :  { %2937 = vmatprep.subr.mxu1 %v3071_v49 }
 0xda5   :  { %2938 = vmatpush3.msra.mxu1 %v3071_v49 }
 0xda6   :  { %2907 = vmatmul.mubr.msk.f32.gmra.mxu1 %vm597_vm6, %v3435_v54  ;;  %2939 = vmatprep.subr.mxu1 %v3072_v52  ;;  %v3074_v54 = vld [vmem:[%s3857_s3 + $0x10] sm:$0xff] }
 0xda7   :  { %2909 = vmatprep.mubr.msk.f32.mxu1 %vm597_vm6, %v3433_v53  ;;  %2940 = vmatpush3.msra.mxu1 %v3072_v52  ;;  %v3075_v53 = vld [vmem:[%s3857_s3] sm:$0xff] }
 0xda8   :  { %2941 = vmatprep.subr.mxu1 %v3073_v51 }
 0xda9   :  { %2942 = vmatpush3.msra.mxu1 %v3073_v51 }
 0xdaa   :  { %2910 = vmatmul.mubr.msk.f32.gmra.mxu1 %vm597_vm6, %v3441_v55  ;;  %2943 = vmatprep.subr.mxu1 %v3074_v54 }
 0xdab   :  { %2944 = vmatpush3.msra.mxu1 %v3074_v54 }
 0xdac   :  { %2945 = vmatprep.subr.mxu1 %v3075_v53 }
 0xdad   :  { %2946 = vmatpush3.msra.mxu1 %v3075_v53 }
 0xe5e   :  { %v2902_v3 = vpop.f32.mrf.mxu1 }
 0xe5f   :  { %v1652_v15 = vmul.f32 %v3074_v54, %v2902_v3  ;;  %v2521_v54 = vld [vmem:[%s3861_s7 + $0x11] ss:$0 sm:$0xff] }
 0xe60   :  { %v1612_v4 = vpop.f32.mrf.mxu1 }
 0xe61   :  { %v1651_v17 = vmul.f32 %v3075_v53, %v1612_v4  ;;  %v1659_v42 = vmul.f32 %v1612_v4, %v3505_v22 }
 0xe62   :  { %v2905_v27 = vpop.f32.mrf.mxu1 }
 0xe63   :  { %v1654_v8 = vmul.f32 %v3072_v52, %v2905_v27 }
 0xe64   :  { %v1622_v29 = vpop.f32.mrf.mxu1 }
 0xe65   :  { %v1653_v12 = vmul.f32 %v3073_v51, %v1622_v29 }
 0xe66   :  { %v2908_v28 = vpop.f32.mrf.mxu1 }
 0xe67   :  { %v1656_v6 = vmul.f32 %v3070_v50, %v2908_v28 }
 0xe68   :  { %v1632_v31 = vpop.f32.mrf.mxu1 }
 0xe69   :  { %v1655_v7 = vmul.f32 %v3071_v49, %v1632_v31  ;;  %v1663_v18 = vmul.f32 %v1632_v31, %v3491_v10  ;;  %v1660_v10 = vmul.f32 %v2902_v3, %v3516_v36 }
 0xe6a   :  { %v2911_v33 = vpop.f32.mrf.mxu1 }
 0xe6b   :  { %v1658_v55 = vmul.f32 %v3068_v0, %v2911_v33  ;;  %v1666_v40 = vmul.f32 %v2911_v33, %v3493_v11 }
 0xe6c   :  { %v1642_v32 = vpop.f32.mrf.mxu1 }
 0xe6d   :  { %v1657_v5 = vmul.f32 %v3069_v2, %v1642_v32  ;;  %2912 = vmatprep.subr.msk.mxu0 %vm480_vm4, %v1658_v55  ;;  %v1665_v39 = vmul.f32 %v1642_v32, %v3489_v9  ;;  %v1662_v9 = vmul.f32 %v2905_v27, %v3508_v23 }
 0xe6e   :  { %2913 = vmatpush3.xpose.msk.msra.mxu0 %vm480_vm4, %v1658_v55 }
 0xe6f   :  { %2914 = vmatprep.subr.msk.mxu0 %vm480_vm4, %v1657_v5 }
 0xe72   :  { %2915 = vmatpush3.xpose.msk.msra.mxu0 %vm480_vm4, %v1657_v5 }
 0xe73   :  { %2916 = vmatprep.subr.msk.mxu0 %vm480_vm4, %v1656_v6 }
 0xe76   :  { %2917 = vmatpush3.xpose.msk.msra.mxu0 %vm480_vm4, %v1656_v6 }
 0xe77   :  { %2918 = vmatprep.subr.msk.mxu0 %vm480_vm4, %v1655_v7 }
 0xe7a   :  { %2919 = vmatpush3.xpose.msk.msra.mxu0 %vm480_vm4, %v1655_v7 }
 0xe7b   :  { %2920 = vmatprep.subr.msk.mxu0 %vm480_vm4, %v1654_v8 }
 0xe7e   :  { %2921 = vmatpush3.xpose.msk.msra.mxu0 %vm480_vm4, %v1654_v8 }
 0xe7f   :  { %2922 = vmatprep.subr.msk.mxu0 %vm480_vm4, %v1653_v12 }
 0xe82   :  { %2923 = vmatpush3.xpose.msk.msra.mxu0 %vm480_vm4, %v1653_v12 }
 0xe83   :  { %2924 = vmatprep.subr.msk.mxu0 %vm480_vm4, %v1652_v15 }
 0xe86   :  { %2925 = vmatpush3.xpose.msk.msra.mxu0 %vm480_vm4, %v1652_v15 }
 0xe87   :  { %2926 = vmatprep.subr.msk.mxu0 %vm480_vm4, %v1651_v17 }
 0xe8a   :  { %2927 = vmatpush3.xpose.msk.msra.mxu0 %vm480_vm4, %v1651_v17 }
 0xe8b   :  { %2969 = vmatprep.subr.mxu0 %v2520_v46 }
 0xe8d   :  { %2929 = vmatmul.mubr.msk.f32.vlgmr.msra.gmra.mxu0 %vm480_vm4, %v3667_v58 }
 0xe8e   :  { %2970 = vmatpush3.msra.mxu0 %v2520_v46 }
 0xe8f   :  { %2971 = vmatprep.subr.mxu0 %v2519_v21 }
 0xe90   :  { %2972 = vmatpush3.msra.mxu0 %v2519_v21 }
 0xe91   :  { %2973 = vmatprep.subr.mxu0 %v2518_v60 }
 0xe92   :  { %2974 = vmatpush3.msra.mxu0 %v2518_v60 }
 0xe93   :  { %2975 = vmatprep.subr.mxu0 %v2517_v61 }
 0xe94   :  { %2976 = vmatpush3.msra.mxu0 %v2517_v61 }
 0xe95   :  { %2977 = vmatprep.subr.mxu0 %v2516_v62 }
 0xe96   :  { %2978 = vmatpush3.msra.mxu0 %v2516_v62 }
 0xe97   :  { %2979 = vmatprep.subr.mxu0 %v2515_v20 }
 0xe98   :  { %2980 = vmatpush3.msra.mxu0 %v2515_v20 }
 0xf4d   :  { %v2930_v19 = vpop.f32.mrf.mxu0 }
 0xf4e   :  { %v1767_v24 = vadd.f32 %v2930_v19, %v3478_v30  ;;  %v1661_v30 = vmul.f32 %v1622_v29, %v3497_v13  ;;  %v2536_v19 = vld [vmem:[%s3860_s6 + $0xd8] sm:$0xff] }
 0xf4f   :  { %v1761_v25 = vpop.f32.mrf.mxu0  ;;  %2999 = vmatprep.subr.mxu0 %v2536_v19 }
 0xf50   :  { %v1762_v35 = vadd.f32 %v1761_v25, %v3483_v34  ;;  %v1773_v37 = vsel %vm54_vm1, %v1767_v24, -inf  ;;  %v1664_v34 = vmul.f32 %v2908_v28, %v3499_v14  ;;  %v2534_v25 = vld [vmem:[%s3860_s6 + $0xc8] sm:$0xff] }
 0xf51   :  { %1774 = vmax.xlane.f32.xlu1 %v1773_v37 }
 0xf52   :  { %v1770_v38 = vsel %vm54_vm1, %v1762_v35, -inf }
 0xf53   :  { %1771 = vmax.xlane.f32.xlu0 %v1770_v38 }
 0xf62   :  { %1883 = vrot.lane.b32.xlu1 %v1665_v39, %s3105_s25 }
 0xf66   :  { %1879 = vrot.lane.b32.xlu1 %v1663_v18, %s3105_s25 }
 0xf69   :  { %1885 = vrot.lane.b32.xlu0 %v1666_v40, %s3105_s25 }
 0xf6a   :  { %1875 = vrot.lane.b32.xlu1 %v1661_v30, %s3105_s25 }
 0xf6d   :  { %1881 = vrot.lane.b32.xlu0 %v1664_v34, %s3105_s25 }
 0xf6e   :  { %1871 = vrot.lane.b32.xlu1 %v1659_v42, %s3105_s25 }
 0xf71   :  { %1877 = vrot.lane.b32.xlu0 %v1662_v9, %s3105_s25 }
 0xf75   :  { %1873 = vrot.lane.b32.xlu0 %v1660_v10, %s3105_s25 }
 0xfda   :  { %v1775_v11 = vpop.xlane.xlu1 %1774 }
 0xfdb   :  { %v1777_v13 = vsub.f32 %v1767_v24, %v1775_v11  ;;  %v2535_v24 = vld [vmem:[%s3860_s6 + $0xd0] sm:$0xff] }
 0xfdc   :  { %v1772_v16 = vpop.xlane.xlu0 %1771 }
 0xfdd   :  { %v1776_v44 = vsub.f32 %v1762_v35, %v1772_v16  ;;  %v1780_v45 = vmul.f32 1.442695, %v1777_v13  ;;  %v2533_v35 = vld [vmem:[%s3860_s6 + $0xc0] sm:$0xff] }
 0xfde   :  { %v1884_v22 = vpop.permute.xlu1 %1883 }
 0xfdf   :  { %v1778_v14 = vmul.f32 1.442695, %v1776_v44  ;;  %v2524_v44 = vld [vmem:[%s3861_s7 + $0x14] ss:$0 sm:$0xff] }
 0xfe0   :  { %v1886_v47 = vpop.permute.xlu0 %1885 }
 0xfe1   :  { %3052 = vpow2.f32 %v1778_v14  ;;  %2950 = vmatprep.subr.mxu1 %v1886_v47 }
 0xfe2   :  { %3054 = vpow2.f32 %v1780_v45  ;;  %v1880_v36 = vpop.permute.xlu1 %1879 }
 0xfe4   :  { %v1882_v23 = vpop.permute.xlu0 %1881 }
 0xfe6   :  { %v1876_v1 = vpop.permute.xlu1 %1875 }
 0xfe8   :  { %v1878_v56 = vpop.permute.xlu0 %1877 }
 0xfea   :  { %v1872_v59 = vpop.permute.xlu1 %1871 }
 0xfec   :  { %v1874_v58 = vpop.permute.xlu0 %1873 }
 0xfee   :  { %v3053_v48 = vpop.eup %3052 }
 0xfef   :  { %v3055_v57 = vpop.eup %3054  ;;  %2947 = vmatprep.mubr.msk.f32.mxu1 %vm54_vm1, %v3053_v48 }
 0xff0   :  { %2948 = vmatmul.mubr.msk.f32.vlgmr.msra.gmra.mxu1 %vm54_vm1, %v3055_v57 }
 0xff1   :  { %2951 = vmatpush3.msra.mxu1 %v1886_v47  ;;  %2966 = vmatprep.mubr.msk.f32.mxu1 %vm54_vm1, %v3053_v48 }
 0xff2   :  { %2952 = vmatprep.subr.mxu1 %v1884_v22 }
 0xff3   :  { %2953 = vmatpush3.msra.mxu1 %v1884_v22  ;;  %v2525_v22 = vld [vmem:[%s3861_s7 + $0x15] ss:$0 sm:$0xff] }
 0xff4   :  { %2954 = vmatprep.subr.mxu1 %v1882_v23 }
 0xff5   :  { %2955 = vmatpush3.msra.mxu1 %v1882_v23 }
 0xff6   :  { %2956 = vmatprep.subr.mxu1 %v1880_v36 }
 0xff7   :  { %2957 = vmatpush3.msra.mxu1 %v1880_v36  ;;  %v2532_v36 = vld [vmem:[%s3860_s6 + $0xb8] sm:$0xff] }
 0xff8   :  { %2958 = vmatprep.subr.mxu1 %v1878_v56 }
 0xff9   :  { %2959 = vmatpush3.msra.mxu1 %v1878_v56  ;;  %v2531_v56 = vld [vmem:[%s3860_s6 + $0xb0] sm:$0xff] }
 0xffa   :  { %2960 = vmatprep.subr.mxu1 %v1876_v1 }
 0xffb   :  { %2961 = vmatpush3.msra.mxu1 %v1876_v1  ;;  %v2530_v1 = vld [vmem:[%s3860_s6 + $0xa8] sm:$0xff] }
 0xffc   :  { %2962 = vmatprep.subr.mxu1 %v1874_v58 }
 0xffd   :  { %2963 = vmatpush3.msra.mxu1 %v1874_v58  ;;  %v2529_v58 = vld [vmem:[%s3860_s6 + $0xa0] sm:$0xff] }
 0xffe   :  { %2964 = vmatprep.subr.mxu1 %v1872_v59 }
 0xfff   :  { %2965 = vmatpush3.msra.mxu1 %v1872_v59  ;;  %v2526_v59 = vld [vmem:[%s3861_s7 + $0x12] ss:$0 sm:$0xff] }
0x1000   :  { %2967 = vmatmul.mubr.msk.f32.vlgmr.msra.gmra.mxu1 %vm54_vm1, %v3055_v57 }
0x10b0   :  { %v2949_v26 = vpop.f32.mrf.mxu1 }
0x10b2   :  { %v1854_v63 = vpop.f32.mrf.mxu1 }
0x10b3   :  { %3056 = vrcp.f32 %v1854_v63 }
0x10b4   :  { %3058 = vrcp.f32 %v2949_v26  ;;  %v2537_v26 = vld [vmem:[%s3861_s7 + $0x13] ss:$0 sm:$0xff] }
0x10c0   :  { %v3057_v0 = vpop.eup %3056  ;;  %v2968_v2 = vpop.f32.mrf.mxu1 }
0x10c1   :  { %v3059_v50 = vpop.eup %3058 }
0x10c2   :  { %v1961_v49 = vpop.f32.mrf.mxu1  ;;  %v1973_v51 = vmul.f32 %v3059_v50, %v2968_v2 }
0x10c3   :  { %v1972_v52 = vmul.f32 %v3057_v0, %v1961_v49 }
0x10c5   :  { %2981 = vmatprep.mubr.msk.f32.mxu0 %vm480_vm4, %v1972_v52 }
0x10c6   :  { %2982 = vmatmul.mubr.msk.f32.vlgmr.msra.gmra.mxu0 %vm480_vm4, %v1973_v51 }
0x10c7   :  { %3000 = vmatpush3.msra.mxu0 %v2536_v19 }
0x10c8   :  { %3001 = vmatprep.subr.mxu0 %v2535_v24 }
0x10c9   :  { %3002 = vmatpush3.msra.mxu0 %v2535_v24  ;;  %v2540_v24 = vld [vmem:[%s3861_s7 + $0x16] ss:$0 sm:$0xff] }
0x10ca   :  { %3003 = vmatprep.subr.mxu0 %v2534_v25 }
0x10cb   :  { %3004 = vmatpush3.msra.mxu0 %v2534_v25 }
0x10cc   :  { %3005 = vmatprep.subr.mxu0 %v2533_v35 }
0x10cd   :  { %3006 = vmatpush3.msra.mxu0 %v2533_v35  ;;  %v2541_v35 = vld [vmem:[%s3861_s7 + $0x17] ss:$0 sm:$0xff]  ;;  %s3078_s7 = scalar_lea.vmem %s2420_s30, 256 }
0x10ce   :  { %3007 = vmatprep.subr.mxu0 %v2532_v36  ;;  %p3079_p0 = scmp.ne.s32.totalorder %s2420_s30, %s3078_s7  ;;  %p3084_p2 = scmp.lt.s32.totalorder %s3078_s7, %s3078_s7 }
0x10cf   :  { %3008 = vmatpush3.msra.mxu0 %v2532_v36 }
0x10d0   :  { %3009 = vmatprep.subr.mxu0 %v2531_v56  ;;  %p3085_p3 = por %p3084_p2, %p3083_p1 }
0x10d1   :  { %3010 = vmatpush3.msra.mxu0 %v2531_v56 }
0x10d2   :  { %3011 = vmatprep.subr.mxu0 %v2530_v1  ;;  %p3086_p4 = pnand %p3085_p3, %p3079_p0 }
0x10d3   :  { %3012 = vmatpush3.msra.mxu0 %v2530_v1 }
0x10d4   :  { %3013 = vmatprep.subr.mxu0 %v2529_v58 }
0x10d5   :  { %3014 = vmatpush3.msra.mxu0 %v2529_v58 }
0x1186   :  { %v2983_v53 = vpop.f32.mrf.mxu0 }
0x1187   :  { %v2060_v3 = vadd.f32 %v2983_v53, %v2521_v54  ;;  %v3076_v53 = vld [vmem:[%s3857_s3 + $0x8] sm:$0xff] }
0x1188   :  { %v2054_v4 = vpop.f32.mrf.mxu0 }
0x1189   :  { %v2055_v27 = vadd.f32 %v2521_v54, %v2054_v4  ;;  %v2064_v29 = vadd.f32 %v2060_v3, %v3655_v43 }
0x118b   :  { %v2070_v28 = vsel %vm480_vm4, %v2064_v29, 0.0  ;;  %v2063_v31 = vadd.f32 %v2055_v27, %v3650_v41 }
0x118c   :  { %2071 = vadd.xlane.f32.xlu1 %v2070_v28 }
0x118d   :  { %v2067_v33 = vsel %vm480_vm4, %v2063_v31, 0.0 }
0x118e   :  { %2068 = vadd.xlane.f32.xlu0 %v2067_v33 }
0x119d   :  { %2114 = vrot.lane.b32.xlu1 %v2520_v46, %s3105_s25 }
0x11a1   :  { %2110 = vrot.lane.b32.xlu1 %v2518_v60, %s3105_s25 }
0x11a5   :  { %2108 = vrot.lane.b32.xlu1 %v2517_v61, %s3105_s25 }
0x11a9   :  { %2104 = vrot.lane.b32.xlu1 %v2515_v20, %s3105_s25 }
0x1215   :  { %v2072_v55 = vpop.xlane.xlu1 %2071 }
0x1216   :  { %v2074_v32 = vmul.f32 0.020833334, %v2072_v55 }
0x1217   :  { %v2069_v5 = vpop.xlane.xlu0 %2068 }
0x1218   :  { %v2076_v43 = vsub.f32 %v2064_v29, %v2074_v32  ;;  %v2073_v6 = vmul.f32 0.020833334, %v2069_v5 }
0x1219   :  { %v2115_v17 = vpop.permute.xlu1 %2114 }
0x121a   :  { %v2075_v7 = vsub.f32 %v2063_v31, %v2073_v6  ;;  %v2078_v8 = vmul.f32 %v2076_v43, %v2076_v43  ;;  %2984 = vmatprep.subr.mxu1 %v2115_v17 }
0x121b   :  { %2985 = vmatpush3.msra.mxu1 %v2115_v17 }
0x121c   :  { %v2082_v41 = vsel %vm480_vm4, %v2078_v8, 0.0  ;;  %v2077_v12 = vmul.f32 %v2075_v7, %v2075_v7 }
0x121d   :  { %2083 = vadd.xlane.f32.xlu0 %v2082_v41  ;;  %v2111_v39 = vpop.permute.xlu1 %2110 }
0x121e   :  { %v2079_v15 = vsel %vm480_vm4, %v2077_v12, 0.0 }
0x1221   :  { %2080 = vadd.xlane.f32.xlu0 %v2079_v15  ;;  %v2109_v9 = vpop.permute.xlu1 %2108 }
0x1225   :  { %v2105_v11 = vpop.permute.xlu1 %2104 }
0x1237   :  { %2112 = vrot.lane.b32.xlu0 %v2519_v21, %s3105_s25 }
0x123b   :  { %2106 = vrot.lane.b32.xlu0 %v2516_v62, %s3105_s25 }
0x12a6   :  { %v2084_v37 = vpop.xlane.xlu0 %2083 }
0x12a7   :  { %v2086_v38 = vmul.f32 0.020833334, %v2084_v37 }
0x12a9   :  { %v2088_v18 = vadd.f32 1e-05, %v2086_v38 }
0x12aa   :  { %v2081_v40 = vpop.xlane.xlu0 %2080 }
0x12ab   :  { %3060 = vrsqrt.f32 %v2088_v18  ;;  %v2085_v30 = vmul.f32 0.020833334, %v2081_v40 }
0x12ad   :  { %v2087_v34 = vadd.f32 1e-05, %v2085_v30 }
0x12ae   :  { %v2113_v42 = vpop.permute.xlu0 %2112 }
0x12af   :  { %3062 = vrsqrt.f32 %v2087_v34  ;;  %2986 = vmatprep.subr.mxu1 %v2113_v42 }
0x12b0   :  { %2987 = vmatpush3.msra.mxu1 %v2113_v42 }
0x12b1   :  { %2988 = vmatprep.subr.mxu1 %v2111_v39 }
0x12b2   :  { %2989 = vmatpush3.msra.mxu1 %v2111_v39  ;;  %v2107_v10 = vpop.permute.xlu0 %2106 }
0x12b3   :  { %2990 = vmatprep.subr.mxu1 %v2109_v9 }
0x12b4   :  { %2991 = vmatpush3.msra.mxu1 %v2109_v9 }
0x12b5   :  { %2992 = vmatprep.subr.mxu1 %v2107_v10 }
0x12b6   :  { %2993 = vmatpush3.msra.mxu1 %v2107_v10 }
0x12b7   :  { %2994 = vmatprep.subr.mxu1 %v2105_v11 }
0x12b8   :  { %v3061_v13 = vpop.eup %3060  ;;  %2995 = vmatpush3.msra.mxu1 %v2105_v11 }
0x12b9   :  { %v2092_v16 = vmul.f32 %v3061_v13, %v2076_v43  ;;  %v3077_v43 = vld [vmem:[%s3857_s3 + $0x18] sm:$0xff] }
0x12bb   :  { %v2094_v47 = vmul.f32 %v2524_v44, %v2092_v16 }
0x12bc   :  { %v3063_v45 = vpop.eup %3062 }
0x12bd   :  { %v2091_v14 = vmul.f32 %v3063_v45, %v2075_v7  ;;  %v2096_v23 = vadd.f32 %v2525_v22, %v2094_v47 }
0x12bf   :  { %v2093_v48 = vmul.f32 %v2524_v44, %v2091_v14 }
0x12c1   :  { %v2095_v57 = vadd.f32 %v2525_v22, %v2093_v48 }
0x12c3   :  { %2996 = vmatprep.mubr.msk.f32.mxu1 %vm480_vm4, %v2095_v57 }
0x12c4   :  { %2997 = vmatmul.mubr.msk.f32.vlgmr.msra.gmra.mxu1 %vm480_vm4, %v2096_v23 }
0x1384   :  { %v2998_v46 = vpop.f32.mrf.mxu1 }
0x1385   :  { %v2200_v21 = vadd.f32 %v2998_v46, %v2526_v59 }
0x1386   :  { %v2194_v60 = vpop.f32.mrf.mxu1 }
0x1387   :  { %v2195_v61 = vadd.f32 %v2526_v59, %v2194_v60  ;;  %v2204_v20 = vmax.f32 %v2200_v21, 0.0 }
0x1389   :  { %v2203_v62 = vmax.f32 %v2195_v61, 0.0 }
0x138b   :  { %3015 = vmatprep.mubr.msk.f32.mxu0 %vm54_vm1, %v2203_v62 }
0x138c   :  { %3016 = vmatmul.mubr.msk.f32.vlgmr.msra.gmra.mxu0 %vm54_vm1, %v2204_v20 }
0x144c   :  { %v3017_v63 = vpop.f32.mrf.mxu0 }
0x144d   :  { %v2292_v0 = vadd.f32 %v3017_v63, %v2537_v26 }
0x144e   :  { %v2286_v2 = vpop.f32.mrf.mxu0 }
0x144f   :  { %v2287_v50 = vadd.f32 %v2537_v26, %v2286_v2  ;;  %v2296_v49 = vadd.f32 %v2292_v0, %v2096_v23 }
0x1451   :  { %v2302_v52 = vsel %vm480_vm4, %v2296_v49, 0.0  ;;  %v2295_v51 = vadd.f32 %v2287_v50, %v2095_v57 }
0x1452   :  { %2303 = vadd.xlane.f32.xlu0 %v2302_v52 }
0x1453   :  { %v2299_v54 = vsel %vm480_vm4, %v2295_v51, 0.0 }
0x1454   :  { %2300 = vadd.xlane.f32.xlu1 %v2299_v54 }
0x1465   :  { %2329 = vrot.lane.b32.xlu1 %v3076_v53, %s3107_s24 }
0x14db   :  { %v2304_v3 = vpop.xlane.xlu0 %2303 }
0x14dc   :  { %v2306_v4 = vmul.f32 0.020833334, %v2304_v3 }
0x14dd   :  { %v2301_v27 = vpop.xlane.xlu1 %2300 }
0x14de   :  { %v2308_v29 = vsub.f32 %v2296_v49, %v2306_v4  ;;  %v2305_v28 = vmul.f32 0.020833334, %v2301_v27 }
0x14e0   :  { %v2307_v31 = vsub.f32 %v2295_v51, %v2305_v28  ;;  %v2310_v33 = vmul.f32 %v2308_v29, %v2308_v29 }
0x14e1   :  { %v2330_v6 = vpop.permute.xlu1 %2329 }
0x14e2   :  { %v2314_v55 = vsel %vm480_vm4, %v2310_v33, 0.0  ;;  %v2309_v32 = vmul.f32 %v2307_v31, %v2307_v31  ;;  %3022 = vmatprep.mubr.msk.f32.mxu1 %vm597_vm6, %v2330_v6 }
0x14e3   :  { %2315 = vadd.xlane.f32.xlu0 %v2314_v55 }
0x14e4   :  { %v2311_v5 = vsel %vm480_vm4, %v2309_v32, 0.0 }
0x14e7   :  { %2312 = vadd.xlane.f32.xlu0 %v2311_v5 }
0x14fd   :  { %2331 = vrot.lane.b32.xlu0 %v3077_v43, %s3107_s24 }
0x156c   :  { %v2316_v7 = vpop.xlane.xlu0 %2315 }
0x156d   :  { %v2318_v8 = vmul.f32 0.020833334, %v2316_v7 }
0x156f   :  { %v2320_v41 = vadd.f32 1e-05, %v2318_v8 }
0x1570   :  { %v2313_v12 = vpop.xlane.xlu0 %2312 }
0x1571   :  { %3064 = vrsqrt.f32 %v2320_v41  ;;  %v2317_v15 = vmul.f32 0.020833334, %v2313_v12 }
0x1573   :  { %v2319_v17 = vadd.f32 1e-05, %v2317_v15 }
0x1574   :  { %v2332_v34 = vpop.permute.xlu0 %2331 }
0x1575   :  { %3066 = vrsqrt.f32 %v2319_v17 }
0x157e   :  { %v3065_v19 = vpop.eup %3064 }
0x157f   :  { %v2324_v25 = vmul.f32 %v3065_v19, %v2308_v29 }
0x1581   :  { %v2326_v37 = vmul.f32 %v2540_v24, %v2324_v25 }
0x1582   :  { %v3067_v38 = vpop.eup %3066 }
0x1583   :  { %v2328_v39 = vadd.f32 %v2541_v35, %v2326_v37  ;;  %v2323_v18 = vmul.f32 %v3067_v38, %v2307_v31 }
0x1585   :  { %3018 = vmatprep.subr.mxu1 %v2328_v39  ;;  %v2325_v40 = vmul.f32 %v2540_v24, %v2323_v18 }
0x1586   :  { %3019 = vmatpush3.msra.mxu1 %v2328_v39 }
0x1587   :  { %v2327_v30 = vadd.f32 %v2541_v35, %v2325_v40 }
0x1589   :  { %3020 = vmatprep.subr.mxu1 %v2327_v30 }
0x158a   :  { %3021 = vmatpush3.msra.mxu1 %v2327_v30 }
0x158b   :  { %3023 = vmatmul.mubr.msk.f32.vlgmr.msra.gmra.mxu1 %vm597_vm6, %v2332_v34 }
0x164b   :  { %v3024_v42 = vpop.f32.mrf.mxu1 }
0x164c   :  { %2413 = vst.msk [vmem:[#allocation2 + $0x8] sm:$0xff] %vm480_vm4, %v3024_v42 }
0x164d   :  { %v2403_v9 = vpop.f32.mrf.mxu1 }
0x164e   :  { %2412 = vst.msk [vmem:[#allocation2] sm:$0xff] %vm480_vm4, %v2403_v9 }
0x164f   :  { %3089 = shalt.err (!%p3086_p4)
}
0x1650   :  { %s3109_s0 = smov 128   ;;  %s3110_s9 = smov 8  }
0x1651   :  { %2425 = dma.vmem_to_hbm [thread:$0]  %s2420_s30, 256, %s3862_s8, [#allocation3], %s3109_s0, %s3109_s0, %s3110_s9  }
0x1652   :  { %3098 = dma.done.wait [#allocation3], 256  }
0x1653   :  { %3099 = vsyncadd [#allocation3], 4294967040 }
0x1654   :  { %2429 = vsyncpa [#allocation3], 1 }

</bundles_post_ra>
